<compile_context>
chip_gen: v5e
topology: v5e:2x2
jax: 0.10.0
libtpu: 0.0.40
codegen_flags: <defaults>
</compile_context>

<pallas_src>
import functools

import jax
import jax.numpy as jnp
import numpy as np
from jax.experimental import pallas as pl
from jax.experimental.pallas import tpu as pltpu

_SUBLANE = 8    # f32 sublane granularity
_LANE = 128     # lane width


def _round_up(x, m):
    return (x + m - 1) // m * m


def _make_lstm_kernel(num_layers: int, hidden_size: int, seq_len: int, batch_pad: int):
    """Builds the Pallas kernel body for a static configuration.

    Ref order (all whole-array VMEM refs):
      x_ref            (T*B, D_in)   time-major, batch padded to B (= batch_pad)
      w_ih0_ref        (D_in, 4H)    layer-0 input weights, pre-transposed,
                                     g-gate columns pre-scaled by 2
      w_hh0_ref        (H, 4H)       layer-0 recurrent weights (f32), g-scaled
      b0_ref           (1, 4H)       layer-0 b_ih + b_hh (f32), g-scaled
      per layer l = 1..n-1 (2 refs each):
        w_cat_ref[l]   (2H, 4H)      [W_ih_l ; W_hh_l] pre-transposed + stacked
                                     along K (f32), g-scaled
        b_ref[l]       (1, 4H)       b_ih + b_hh (f32), g-scaled
      w_fc_ref         (H, O_pad)    pre-transposed, lane-padded (f32)
      b_fc_ref         (1, O_pad)
      out_ref          (B, O_pad)
    """
    n, H, T, B = num_layers, hidden_size, seq_len, batch_pad

    def lstm_cell(gates, c_prev):
        # One full-vreg sigmoid over (B, 4H) on the EUP; the candidate gate's
        # tanh is recovered from the same pass (its weight columns were
        # pre-scaled by 2):  tanh(z) = 2*sigmoid(2z) - 1.
        sig = jax.nn.sigmoid(gates)
        i_g = sig[:, 0 * H:1 * H]
        f_g = sig[:, 1 * H:2 * H]
        g_g = 2.0 * sig[:, 2 * H:3 * H] - 1.0
        o_g = sig[:, 3 * H:4 * H]
        c_new = f_g * c_prev + i_g * g_g
        h_new = o_g * jnp.tanh(c_new)
        return h_new, c_new

    def kernel(x_ref, w_ih0_ref, w_hh0_ref, b0_ref, *refs):
        w_cat = [refs[2 * i][...] for i in range(n - 1)]        # (2H, 4H) f32
        b_cat = [refs[2 * i + 1][...] for i in range(n - 1)]    # (1, 4H)  f32
        w_fc_ref = refs[2 * (n - 1)]
        b_fc_ref = refs[2 * (n - 1) + 1]
        out_ref = refs[2 * (n - 1) + 2]

        # Off the serial critical path: layer-0 input projection for ALL
        # timesteps in one batched (T*B, D)x(D, 4H) matmul, bias folded in.
        proj0 = (
            jnp.dot(x_ref[...], w_ih0_ref[...], preferred_element_type=jnp.float32)
            + b0_ref[...]
        )                                                       # (T*B, 4H) f32
        w_hh0 = w_hh0_ref[...]                                  # (H, 4H)  f32

        # Wavefront: diagonal d updates layer l at time t = d - l.  h/c are
        # plain (B, H) f32 values living in vregs (no stacked carries).
        h = [jnp.zeros((B, H), jnp.float32) for _ in range(n)]
        c = [jnp.zeros((B, H), jnp.float32) for _ in range(n)]
        for d in range(T + n - 1):              # static, fully unrolled
            # Descending l so h[l-1] still holds layer (l-1)'s output at time t
            # (produced on diagonal d-1) when layer l consumes it.
            for l in range(min(n - 1, d), -1, -1):
                t = d - l
                if not 0 <= t < T:
                    continue
                if l == 0:
                    gates = proj0[t * B:(t + 1) * B, :] + jnp.dot(
                        h[0], w_hh0, preferred_element_type=jnp.float32)
                else:
                    # Fused input + recurrent projection: single K = 2H matmul.
                    xin = jnp.concatenate([h[l - 1], h[l]], axis=1)   # (B, 2H)
                    gates = jnp.dot(
                        xin, w_cat[l - 1], preferred_element_type=jnp.float32
                    ) + b_cat[l - 1]
                h[l], c[l] = lstm_cell(gates, c[l])

        # Final linear on the last layer's last-timestep hidden state.
        out_ref[...] = (
            jnp.dot(h[n - 1], w_fc_ref[...], preferred_element_type=jnp.float32)
            + b_fc_ref[...]
        )

    return kernel


def init_params(key, input_size, hidden_size, num_layers, output_size):
    """Deterministic PyTorch-style init (uniform(-1/sqrt(H), 1/sqrt(H)))."""
    params = {"layers": []}
    bound = 1.0 / np.sqrt(hidden_size)
    for l in range(num_layers):
        d_in = input_size if l == 0 else hidden_size
        key, k1, k2, k3, k4 = jax.random.split(key, 5)
        params["layers"].append(
            dict(
                w_ih=jax.random.uniform(k1, (4 * hidden_size, d_in), jnp.float32, -bound, bound),
                w_hh=jax.random.uniform(k2, (4 * hidden_size, hidden_size), jnp.float32, -bound, bound),
                b_ih=jax.random.uniform(k3, (4 * hidden_size,), jnp.float32, -bound, bound),
                b_hh=jax.random.uniform(k4, (4 * hidden_size,), jnp.float32, -bound, bound),
            )
        )
    key, k1, k2 = jax.random.split(key, 3)
    params["w_fc"] = jax.random.uniform(k1, (output_size, hidden_size), jnp.float32, -bound, bound)
    params["b_fc"] = jax.random.uniform(k2, (output_size,), jnp.float32, -bound, bound)
    return params


@functools.partial(
    jax.jit,
    static_argnames=("hidden_size", "num_layers", "output_size", "use_bf16_matmul"),
)
def lstm_model_forward(x, params, *, hidden_size, num_layers, output_size,
                       use_bf16_matmul=False):
    """x: (batch, seq, input_size) -> (batch, output_size)."""
    B, T, D = x.shape
    H = hidden_size
    O = output_size
    B_pad = _round_up(max(B, 1), _SUBLANE)   # sublane-dense batch
    O_pad = _round_up(max(O, 1), _LANE)      # lane-dense output store
    mm_dtype = jnp.bfloat16 if use_bf16_matmul else jnp.float32

    # g-gate columns pre-scaled by 2 so the kernel can use
    # tanh(z) = 2*sigmoid(2z) - 1 (one EUP pass over the gates per step).
    g_scale = jnp.ones((1, 4 * H), jnp.float32).at[:, 2 * H:3 * H].set(2.0)

    # Glue: (B, T, D) -> (T, B_pad, D) -> (T*B_pad, D), so the layer-0 input
    # projection is one well-shaped matmul and each timestep is a contiguous,
    # sublane-aligned block of rows.
    x_tbd = jnp.transpose(x, (1, 0, 2))
    if B_pad != B:
        x_tbd = jnp.pad(x_tbd, ((0, 0), (0, B_pad - B), (0, 0)))
    x_flat = x_tbd.reshape(T * B_pad, D).astype(mm_dtype)

    l0 = params["layers"][0]
    flat_inputs = [
        x_flat,
        (l0["w_ih"].T * g_scale).astype(mm_dtype),                          # (D, 4H)
        (l0["w_hh"].T * g_scale).astype(jnp.float32),                       # (H, 4H)
        ((l0["b_ih"] + l0["b_hh"]).reshape(1, 4 * H) * g_scale).astype(jnp.float32),
    ]
    for l in range(1, num_layers):
        lp = params["layers"][l]
        w_cat = jnp.concatenate([lp["w_ih"].T, lp["w_hh"].T], axis=0)       # (2H, 4H)
        flat_inputs.append((w_cat * g_scale).astype(jnp.float32))
        flat_inputs.append(
            ((lp["b_ih"] + lp["b_hh"]).reshape(1, 4 * H) * g_scale).astype(jnp.float32))
    w_fc = params["w_fc"].T.astype(jnp.float32)                             # (H, O)
    b_fc = params["b_fc"].reshape(1, O).astype(jnp.float32)
    if O_pad != O:
        w_fc = jnp.pad(w_fc, ((0, 0), (0, O_pad - O)))
        b_fc = jnp.pad(b_fc, ((0, 0), (0, O_pad - O)))
    flat_inputs.append(w_fc)
    flat_inputs.append(b_fc)

    kernel = _make_lstm_kernel(num_layers, hidden_size, T, B_pad)

    out_pad = pl.pallas_call(
        kernel,
        out_shape=jax.ShapeDtypeStruct((B_pad, O_pad), jnp.float32),
        in_specs=[pl.BlockSpec(memory_space=pltpu.MemorySpace.VMEM)] * len(flat_inputs),
        out_specs=pl.BlockSpec(memory_space=pltpu.MemorySpace.VMEM),
        compiler_params=pltpu.CompilerParams(vmem_limit_bytes=32 * 1024 * 1024),
    )(*flat_inputs)
    return out_pad[:B, :O]


def lstm_model_reference(x, params, *, hidden_size, num_layers, output_size):
    """Pure-JAX reference reproducing nn.LSTM(batch_first=True) + nn.Linear."""
    B, T, D = x.shape
    H = hidden_size
    inputs = x  # (B, T, D)
    for l in range(num_layers):
        lp = params["layers"][l]
        h = jnp.zeros((B, H), jnp.float32)
        c = jnp.zeros((B, H), jnp.float32)
        outs = []
        for t in range(T):
            xt = inputs[:, t, :]
            gates = xt @ lp["w_ih"].T + lp["b_ih"] + h @ lp["w_hh"].T + lp["b_hh"]
            i_g = jax.nn.sigmoid(gates[:, 0 * H:1 * H])
            f_g = jax.nn.sigmoid(gates[:, 1 * H:2 * H])
            g_g = jnp.tanh(gates[:, 2 * H:3 * H])
            o_g = jax.nn.sigmoid(gates[:, 3 * H:4 * H])
            c = f_g * c + i_g * g_g
            h = o_g * jnp.tanh(c)
            outs.append(h)
        inputs = jnp.stack(outs, axis=1)  # (B, T, H)
    last = inputs[:, -1, :]
    return last @ params["w_fc"].T + params["b_fc"]


if __name__ == "__main__":
    # Small shapes consistent with the module's forward.
    batch, seq, input_size = 2, 8, 16
    hidden_size, num_layers, output_size = 32, 2, 4

    key = jax.random.PRNGKey(0)
    key, xkey, pkey = jax.random.split(key, 3)
    x = jax.random.normal(xkey, (batch, seq, input_size), dtype=jnp.float32)
    params = init_params(pkey, input_size, hidden_size, num_layers, output_size)

    ref = lstm_model_reference(
        x, params, hidden_size=hidden_size, num_layers=num_layers, output_size=output_size
    )

    # f32 matmul path (exact-ish vs the f32 reference).
    out = lstm_model_forward(
        x, params, hidden_size=hidden_size, num_layers=num_layers,
        output_size=output_size, use_bf16_matmul=False,
    )
    out = jax.block_until_ready(out)
    assert out.shape == (batch, output_size)
    np.testing.assert_allclose(np.asarray(out), np.asarray(ref), rtol=1e-4, atol=1e-4)

    # bf16 path: only the batched layer-0 x-projection uses bf16 operands; the
    # per-step recurrence stays f32, so error stays small (loose tolerance kept).
    out_bf16 = lstm_model_forward(
        x, params, hidden_size=hidden_size, num_layers=num_layers,
        output_size=output_size, use_bf16_matmul=True,
    )
    out_bf16 = jax.block_until_ready(out_bf16)
    np.testing.assert_allclose(np.asarray(out_bf16), np.asarray(ref), rtol=1e-1, atol=8e-2)

    print("KERNEL_OK")
</pallas_src>

<mosaic_0001>
module attributes {stable_mosaic.version = 11 : i64} {
  func.func @kernel(%arg0: memref<64x16xf32, #tpu.memory_space<vmem>>, %arg1: memref<16x128xf32, #tpu.memory_space<vmem>>, %arg2: memref<32x128xf32, #tpu.memory_space<vmem>>, %arg3: memref<1x128xf32, #tpu.memory_space<vmem>>, %arg4: memref<64x128xf32, #tpu.memory_space<vmem>>, %arg5: memref<1x128xf32, #tpu.memory_space<vmem>>, %arg6: memref<32x128xf32, #tpu.memory_space<vmem>>, %arg7: memref<1x128xf32, #tpu.memory_space<vmem>>, %arg8: memref<8x128xf32, #tpu.memory_space<vmem>>) attributes {dimension_semantics = [], scalar_prefetch = 0 : i64, scratch_operands = 0 : i64, tpu.core_type = #tpu.core_type<tc>} {
    %c0 = arith.constant 0 : index
    %c0_0 = arith.constant 0 : index
    %0 = vector.load %arg4[%c0, %c0_0] : memref<64x128xf32, #tpu.memory_space<vmem>>, vector<64x128xf32>
    %c0_1 = arith.constant 0 : index
    %c0_2 = arith.constant 0 : index
    %1 = vector.load %arg5[%c0_1, %c0_2] : memref<1x128xf32, #tpu.memory_space<vmem>>, vector<1x128xf32>
    %c0_3 = arith.constant 0 : index
    %c0_4 = arith.constant 0 : index
    %2 = vector.load %arg0[%c0_3, %c0_4] : memref<64x16xf32, #tpu.memory_space<vmem>>, vector<64x16xf32>
    %c0_5 = arith.constant 0 : index
    %c0_6 = arith.constant 0 : index
    %3 = vector.load %arg1[%c0_5, %c0_6] : memref<16x128xf32, #tpu.memory_space<vmem>>, vector<16x128xf32>
    %cst = arith.constant dense<0.000000e+00> : vector<64x128xf32>
    %4 = tpu.matmul %2, %3, %cst {dimension_numbers = #tpu.dot_dimension_numbers<[1], [0], [0], [1], [0, 0, 1, 1], [], []>} : vector<64x16xf32>, vector<16x128xf32>, vector<64x128xf32> -> vector<64x128xf32>
    %c0_7 = arith.constant 0 : index
    %c0_8 = arith.constant 0 : index
    %5 = vector.load %arg3[%c0_7, %c0_8] : memref<1x128xf32, #tpu.memory_space<vmem>>, vector<1x128xf32>
    %6 = vector.broadcast %5 : vector<1x128xf32> to vector<64x128xf32>
    %7 = arith.addf %4, %6 : vector<64x128xf32>
    %c0_9 = arith.constant 0 : index
    %c0_10 = arith.constant 0 : index
    %8 = vector.load %arg2[%c0_9, %c0_10] : memref<32x128xf32, #tpu.memory_space<vmem>>, vector<32x128xf32>
    %cst_11 = arith.constant 0.000000e+00 : f32
    %9 = vector.broadcast %cst_11 : f32 to vector<8x32xf32>
    %cst_12 = arith.constant 0.000000e+00 : f32
    %10 = vector.broadcast %cst_12 : f32 to vector<8x32xf32>
    %cst_13 = arith.constant 0.000000e+00 : f32
    %11 = vector.broadcast %cst_13 : f32 to vector<8x32xf32>
    %cst_14 = arith.constant 0.000000e+00 : f32
    %12 = vector.broadcast %cst_14 : f32 to vector<8x32xf32>
    %13 = vector.extract_strided_slice %7 {offsets = [0, 0], sizes = [8, 128], strides = [1, 1]} : vector<64x128xf32> to vector<8x128xf32>
    %cst_15 = arith.constant dense<0.000000e+00> : vector<8x128xf32>
    %14 = tpu.matmul %9, %8, %cst_15 {dimension_numbers = #tpu.dot_dimension_numbers<[1], [0], [0], [1], [0, 0, 1, 1], [], []>} : vector<8x32xf32>, vector<32x128xf32>, vector<8x128xf32> -> vector<8x128xf32>
    %15 = arith.addf %13, %14 : vector<8x128xf32>
    %16 = arith.negf %15 : vector<8x128xf32>
    %17 = math.exp %16 : vector<8x128xf32>
    %cst_16 = arith.constant 1.000000e+00 : f32
    %18 = vector.broadcast %cst_16 : f32 to vector<8x128xf32>
    %19 = arith.addf %18, %17 : vector<8x128xf32>
    %20 = arith.divf %18, %19 : vector<8x128xf32>
    %21 = vector.extract_strided_slice %20 {offsets = [0, 0], sizes = [8, 32], strides = [1, 1]} : vector<8x128xf32> to vector<8x32xf32>
    %22 = vector.extract_strided_slice %20 {offsets = [0, 32], sizes = [8, 32], strides = [1, 1]} : vector<8x128xf32> to vector<8x32xf32>
    %23 = vector.extract_strided_slice %20 {offsets = [0, 64], sizes = [8, 32], strides = [1, 1]} : vector<8x128xf32> to vector<8x32xf32>
    %cst_17 = arith.constant 2.000000e+00 : f32
    %24 = vector.broadcast %cst_17 : f32 to vector<8x32xf32>
    %25 = arith.mulf %24, %23 : vector<8x32xf32>
    %cst_18 = arith.constant 1.000000e+00 : f32
    %26 = vector.broadcast %cst_18 : f32 to vector<8x32xf32>
    %27 = arith.subf %25, %26 : vector<8x32xf32>
    %28 = vector.extract_strided_slice %20 {offsets = [0, 96], sizes = [8, 32], strides = [1, 1]} : vector<8x128xf32> to vector<8x32xf32>
    %29 = arith.mulf %22, %11 : vector<8x32xf32>
    %30 = arith.mulf %21, %27 : vector<8x32xf32>
    %31 = arith.addf %29, %30 : vector<8x32xf32>
    %32 = math.tanh %31 : vector<8x32xf32>
    %33 = arith.mulf %28, %32 : vector<8x32xf32>
    %34 = tpu.concatenate %33, %10 in 1 : vector<8x32xf32>, vector<8x32xf32> -> vector<8x64xf32>
    %cst_19 = arith.constant dense<0.000000e+00> : vector<8x128xf32>
    %35 = tpu.matmul %34, %0, %cst_19 {dimension_numbers = #tpu.dot_dimension_numbers<[1], [0], [0], [1], [0, 0, 1, 1], [], []>} : vector<8x64xf32>, vector<64x128xf32>, vector<8x128xf32> -> vector<8x128xf32>
    %36 = vector.broadcast %1 : vector<1x128xf32> to vector<8x128xf32>
    %37 = arith.addf %35, %36 : vector<8x128xf32>
    %38 = arith.negf %37 : vector<8x128xf32>
    %39 = math.exp %38 : vector<8x128xf32>
    %cst_20 = arith.constant 1.000000e+00 : f32
    %40 = vector.broadcast %cst_20 : f32 to vector<8x128xf32>
    %41 = arith.addf %40, %39 : vector<8x128xf32>
    %42 = arith.divf %40, %41 : vector<8x128xf32>
    %43 = vector.extract_strided_slice %42 {offsets = [0, 0], sizes = [8, 32], strides = [1, 1]} : vector<8x128xf32> to vector<8x32xf32>
    %44 = vector.extract_strided_slice %42 {offsets = [0, 32], sizes = [8, 32], strides = [1, 1]} : vector<8x128xf32> to vector<8x32xf32>
    %45 = vector.extract_strided_slice %42 {offsets = [0, 64], sizes = [8, 32], strides = [1, 1]} : vector<8x128xf32> to vector<8x32xf32>
    %cst_21 = arith.constant 2.000000e+00 : f32
    %46 = vector.broadcast %cst_21 : f32 to vector<8x32xf32>
    %47 = arith.mulf %46, %45 : vector<8x32xf32>
    %cst_22 = arith.constant 1.000000e+00 : f32
    %48 = vector.broadcast %cst_22 : f32 to vector<8x32xf32>
    %49 = arith.subf %47, %48 : vector<8x32xf32>
    %50 = vector.extract_strided_slice %42 {offsets = [0, 96], sizes = [8, 32], strides = [1, 1]} : vector<8x128xf32> to vector<8x32xf32>
    %51 = arith.mulf %44, %12 : vector<8x32xf32>
    %52 = arith.mulf %43, %49 : vector<8x32xf32>
    %53 = arith.addf %51, %52 : vector<8x32xf32>
    %54 = math.tanh %53 : vector<8x32xf32>
    %55 = arith.mulf %50, %54 : vector<8x32xf32>
    %56 = vector.extract_strided_slice %7 {offsets = [8, 0], sizes = [8, 128], strides = [1, 1]} : vector<64x128xf32> to vector<8x128xf32>
    %cst_23 = arith.constant dense<0.000000e+00> : vector<8x128xf32>
    %57 = tpu.matmul %33, %8, %cst_23 {dimension_numbers = #tpu.dot_dimension_numbers<[1], [0], [0], [1], [0, 0, 1, 1], [], []>} : vector<8x32xf32>, vector<32x128xf32>, vector<8x128xf32> -> vector<8x128xf32>
    %58 = arith.addf %56, %57 : vector<8x128xf32>
    %59 = arith.negf %58 : vector<8x128xf32>
    %60 = math.exp %59 : vector<8x128xf32>
    %cst_24 = arith.constant 1.000000e+00 : f32
    %61 = vector.broadcast %cst_24 : f32 to vector<8x128xf32>
    %62 = arith.addf %61, %60 : vector<8x128xf32>
    %63 = arith.divf %61, %62 : vector<8x128xf32>
    %64 = vector.extract_strided_slice %63 {offsets = [0, 0], sizes = [8, 32], strides = [1, 1]} : vector<8x128xf32> to vector<8x32xf32>
    %65 = vector.extract_strided_slice %63 {offsets = [0, 32], sizes = [8, 32], strides = [1, 1]} : vector<8x128xf32> to vector<8x32xf32>
    %66 = vector.extract_strided_slice %63 {offsets = [0, 64], sizes = [8, 32], strides = [1, 1]} : vector<8x128xf32> to vector<8x32xf32>
    %cst_25 = arith.constant 2.000000e+00 : f32
    %67 = vector.broadcast %cst_25 : f32 to vector<8x32xf32>
    %68 = arith.mulf %67, %66 : vector<8x32xf32>
    %cst_26 = arith.constant 1.000000e+00 : f32
    %69 = vector.broadcast %cst_26 : f32 to vector<8x32xf32>
    %70 = arith.subf %68, %69 : vector<8x32xf32>
    %71 = vector.extract_strided_slice %63 {offsets = [0, 96], sizes = [8, 32], strides = [1, 1]} : vector<8x128xf32> to vector<8x32xf32>
    %72 = arith.mulf %65, %31 : vector<8x32xf32>
    %73 = arith.mulf %64, %70 : vector<8x32xf32>
    %74 = arith.addf %72, %73 : vector<8x32xf32>
    %75 = math.tanh %74 : vector<8x32xf32>
    %76 = arith.mulf %71, %75 : vector<8x32xf32>
    %77 = tpu.concatenate %76, %55 in 1 : vector<8x32xf32>, vector<8x32xf32> -> vector<8x64xf32>
    %cst_27 = arith.constant dense<0.000000e+00> : vector<8x128xf32>
    %78 = tpu.matmul %77, %0, %cst_27 {dimension_numbers = #tpu.dot_dimension_numbers<[1], [0], [0], [1], [0, 0, 1, 1], [], []>} : vector<8x64xf32>, vector<64x128xf32>, vector<8x128xf32> -> vector<8x128xf32>
    %79 = vector.broadcast %1 : vector<1x128xf32> to vector<8x128xf32>
    %80 = arith.addf %78, %79 : vector<8x128xf32>
    %81 = arith.negf %80 : vector<8x128xf32>
    %82 = math.exp %81 : vector<8x128xf32>
    %cst_28 = arith.constant 1.000000e+00 : f32
    %83 = vector.broadcast %cst_28 : f32 to vector<8x128xf32>
    %84 = arith.addf %83, %82 : vector<8x128xf32>
    %85 = arith.divf %83, %84 : vector<8x128xf32>
    %86 = vector.extract_strided_slice %85 {offsets = [0, 0], sizes = [8, 32], strides = [1, 1]} : vector<8x128xf32> to vector<8x32xf32>
    %87 = vector.extract_strided_slice %85 {offsets = [0, 32], sizes = [8, 32], strides = [1, 1]} : vector<8x128xf32> to vector<8x32xf32>
    %88 = vector.extract_strided_slice %85 {offsets = [0, 64], sizes = [8, 32], strides = [1, 1]} : vector<8x128xf32> to vector<8x32xf32>
    %cst_29 = arith.constant 2.000000e+00 : f32
    %89 = vector.broadcast %cst_29 : f32 to vector<8x32xf32>
    %90 = arith.mulf %89, %88 : vector<8x32xf32>
    %cst_30 = arith.constant 1.000000e+00 : f32
    %91 = vector.broadcast %cst_30 : f32 to vector<8x32xf32>
    %92 = arith.subf %90, %91 : vector<8x32xf32>
    %93 = vector.extract_strided_slice %85 {offsets = [0, 96], sizes = [8, 32], strides = [1, 1]} : vector<8x128xf32> to vector<8x32xf32>
    %94 = arith.mulf %87, %53 : vector<8x32xf32>
    %95 = arith.mulf %86, %92 : vector<8x32xf32>
    %96 = arith.addf %94, %95 : vector<8x32xf32>
    %97 = math.tanh %96 : vector<8x32xf32>
    %98 = arith.mulf %93, %97 : vector<8x32xf32>
    %99 = vector.extract_strided_slice %7 {offsets = [16, 0], sizes = [8, 128], strides = [1, 1]} : vector<64x128xf32> to vector<8x128xf32>
    %cst_31 = arith.constant dense<0.000000e+00> : vector<8x128xf32>
    %100 = tpu.matmul %76, %8, %cst_31 {dimension_numbers = #tpu.dot_dimension_numbers<[1], [0], [0], [1], [0, 0, 1, 1], [], []>} : vector<8x32xf32>, vector<32x128xf32>, vector<8x128xf32> -> vector<8x128xf32>
    %101 = arith.addf %99, %100 : vector<8x128xf32>
    %102 = arith.negf %101 : vector<8x128xf32>
    %103 = math.exp %102 : vector<8x128xf32>
    %cst_32 = arith.constant 1.000000e+00 : f32
    %104 = vector.broadcast %cst_32 : f32 to vector<8x128xf32>
    %105 = arith.addf %104, %103 : vector<8x128xf32>
    %106 = arith.divf %104, %105 : vector<8x128xf32>
    %107 = vector.extract_strided_slice %106 {offsets = [0, 0], sizes = [8, 32], strides = [1, 1]} : vector<8x128xf32> to vector<8x32xf32>
    %108 = vector.extract_strided_slice %106 {offsets = [0, 32], sizes = [8, 32], strides = [1, 1]} : vector<8x128xf32> to vector<8x32xf32>
    %109 = vector.extract_strided_slice %106 {offsets = [0, 64], sizes = [8, 32], strides = [1, 1]} : vector<8x128xf32> to vector<8x32xf32>
    %cst_33 = arith.constant 2.000000e+00 : f32
    %110 = vector.broadcast %cst_33 : f32 to vector<8x32xf32>
    %111 = arith.mulf %110, %109 : vector<8x32xf32>
    %cst_34 = arith.constant 1.000000e+00 : f32
    %112 = vector.broadcast %cst_34 : f32 to vector<8x32xf32>
    %113 = arith.subf %111, %112 : vector<8x32xf32>
    %114 = vector.extract_strided_slice %106 {offsets = [0, 96], sizes = [8, 32], strides = [1, 1]} : vector<8x128xf32> to vector<8x32xf32>
    %115 = arith.mulf %108, %74 : vector<8x32xf32>
    %116 = arith.mulf %107, %113 : vector<8x32xf32>
    %117 = arith.addf %115, %116 : vector<8x32xf32>
    %118 = math.tanh %117 : vector<8x32xf32>
    %119 = arith.mulf %114, %118 : vector<8x32xf32>
    %120 = tpu.concatenate %119, %98 in 1 : vector<8x32xf32>, vector<8x32xf32> -> vector<8x64xf32>
    %cst_35 = arith.constant dense<0.000000e+00> : vector<8x128xf32>
    %121 = tpu.matmul %120, %0, %cst_35 {dimension_numbers = #tpu.dot_dimension_numbers<[1], [0], [0], [1], [0, 0, 1, 1], [], []>} : vector<8x64xf32>, vector<64x128xf32>, vector<8x128xf32> -> vector<8x128xf32>
    %122 = vector.broadcast %1 : vector<1x128xf32> to vector<8x128xf32>
    %123 = arith.addf %121, %122 : vector<8x128xf32>
    %124 = arith.negf %123 : vector<8x128xf32>
    %125 = math.exp %124 : vector<8x128xf32>
    %cst_36 = arith.constant 1.000000e+00 : f32
    %126 = vector.broadcast %cst_36 : f32 to vector<8x128xf32>
    %127 = arith.addf %126, %125 : vector<8x128xf32>
    %128 = arith.divf %126, %127 : vector<8x128xf32>
    %129 = vector.extract_strided_slice %128 {offsets = [0, 0], sizes = [8, 32], strides = [1, 1]} : vector<8x128xf32> to vector<8x32xf32>
    %130 = vector.extract_strided_slice %128 {offsets = [0, 32], sizes = [8, 32], strides = [1, 1]} : vector<8x128xf32> to vector<8x32xf32>
    %131 = vector.extract_strided_slice %128 {offsets = [0, 64], sizes = [8, 32], strides = [1, 1]} : vector<8x128xf32> to vector<8x32xf32>
    %cst_37 = arith.constant 2.000000e+00 : f32
    %132 = vector.broadcast %cst_37 : f32 to vector<8x32xf32>
    %133 = arith.mulf %132, %131 : vector<8x32xf32>
    %cst_38 = arith.constant 1.000000e+00 : f32
    %134 = vector.broadcast %cst_38 : f32 to vector<8x32xf32>
    %135 = arith.subf %133, %134 : vector<8x32xf32>
    %136 = vector.extract_strided_slice %128 {offsets = [0, 96], sizes = [8, 32], strides = [1, 1]} : vector<8x128xf32> to vector<8x32xf32>
    %137 = arith.mulf %130, %96 : vector<8x32xf32>
    %138 = arith.mulf %129, %135 : vector<8x32xf32>
    %139 = arith.addf %137, %138 : vector<8x32xf32>
    %140 = math.tanh %139 : vector<8x32xf32>
    %141 = arith.mulf %136, %140 : vector<8x32xf32>
    %142 = vector.extract_strided_slice %7 {offsets = [24, 0], sizes = [8, 128], strides = [1, 1]} : vector<64x128xf32> to vector<8x128xf32>
    %cst_39 = arith.constant dense<0.000000e+00> : vector<8x128xf32>
    %143 = tpu.matmul %119, %8, %cst_39 {dimension_numbers = #tpu.dot_dimension_numbers<[1], [0], [0], [1], [0, 0, 1, 1], [], []>} : vector<8x32xf32>, vector<32x128xf32>, vector<8x128xf32> -> vector<8x128xf32>
    %144 = arith.addf %142, %143 : vector<8x128xf32>
    %145 = arith.negf %144 : vector<8x128xf32>
    %146 = math.exp %145 : vector<8x128xf32>
    %cst_40 = arith.constant 1.000000e+00 : f32
    %147 = vector.broadcast %cst_40 : f32 to vector<8x128xf32>
    %148 = arith.addf %147, %146 : vector<8x128xf32>
    %149 = arith.divf %147, %148 : vector<8x128xf32>
    %150 = vector.extract_strided_slice %149 {offsets = [0, 0], sizes = [8, 32], strides = [1, 1]} : vector<8x128xf32> to vector<8x32xf32>
    %151 = vector.extract_strided_slice %149 {offsets = [0, 32], sizes = [8, 32], strides = [1, 1]} : vector<8x128xf32> to vector<8x32xf32>
    %152 = vector.extract_strided_slice %149 {offsets = [0, 64], sizes = [8, 32], strides = [1, 1]} : vector<8x128xf32> to vector<8x32xf32>
    %cst_41 = arith.constant 2.000000e+00 : f32
    %153 = vector.broadcast %cst_41 : f32 to vector<8x32xf32>
    %154 = arith.mulf %153, %152 : vector<8x32xf32>
    %cst_42 = arith.constant 1.000000e+00 : f32
    %155 = vector.broadcast %cst_42 : f32 to vector<8x32xf32>
    %156 = arith.subf %154, %155 : vector<8x32xf32>
    %157 = vector.extract_strided_slice %149 {offsets = [0, 96], sizes = [8, 32], strides = [1, 1]} : vector<8x128xf32> to vector<8x32xf32>
    %158 = arith.mulf %151, %117 : vector<8x32xf32>
    %159 = arith.mulf %150, %156 : vector<8x32xf32>
    %160 = arith.addf %158, %159 : vector<8x32xf32>
    %161 = math.tanh %160 : vector<8x32xf32>
    %162 = arith.mulf %157, %161 : vector<8x32xf32>
    %163 = tpu.concatenate %162, %141 in 1 : vector<8x32xf32>, vector<8x32xf32> -> vector<8x64xf32>
    %cst_43 = arith.constant dense<0.000000e+00> : vector<8x128xf32>
    %164 = tpu.matmul %163, %0, %cst_43 {dimension_numbers = #tpu.dot_dimension_numbers<[1], [0], [0], [1], [0, 0, 1, 1], [], []>} : vector<8x64xf32>, vector<64x128xf32>, vector<8x128xf32> -> vector<8x128xf32>
    %165 = vector.broadcast %1 : vector<1x128xf32> to vector<8x128xf32>
    %166 = arith.addf %164, %165 : vector<8x128xf32>
    %167 = arith.negf %166 : vector<8x128xf32>
    %168 = math.exp %167 : vector<8x128xf32>
    %cst_44 = arith.constant 1.000000e+00 : f32
    %169 = vector.broadcast %cst_44 : f32 to vector<8x128xf32>
    %170 = arith.addf %169, %168 : vector<8x128xf32>
    %171 = arith.divf %169, %170 : vector<8x128xf32>
    %172 = vector.extract_strided_slice %171 {offsets = [0, 0], sizes = [8, 32], strides = [1, 1]} : vector<8x128xf32> to vector<8x32xf32>
    %173 = vector.extract_strided_slice %171 {offsets = [0, 32], sizes = [8, 32], strides = [1, 1]} : vector<8x128xf32> to vector<8x32xf32>
    %174 = vector.extract_strided_slice %171 {offsets = [0, 64], sizes = [8, 32], strides = [1, 1]} : vector<8x128xf32> to vector<8x32xf32>
    %cst_45 = arith.constant 2.000000e+00 : f32
    %175 = vector.broadcast %cst_45 : f32 to vector<8x32xf32>
    %176 = arith.mulf %175, %174 : vector<8x32xf32>
    %cst_46 = arith.constant 1.000000e+00 : f32
    %177 = vector.broadcast %cst_46 : f32 to vector<8x32xf32>
    %178 = arith.subf %176, %177 : vector<8x32xf32>
    %179 = vector.extract_strided_slice %171 {offsets = [0, 96], sizes = [8, 32], strides = [1, 1]} : vector<8x128xf32> to vector<8x32xf32>
    %180 = arith.mulf %173, %139 : vector<8x32xf32>
    %181 = arith.mulf %172, %178 : vector<8x32xf32>
    %182 = arith.addf %180, %181 : vector<8x32xf32>
    %183 = math.tanh %182 : vector<8x32xf32>
    %184 = arith.mulf %179, %183 : vector<8x32xf32>
    %185 = vector.extract_strided_slice %7 {offsets = [32, 0], sizes = [8, 128], strides = [1, 1]} : vector<64x128xf32> to vector<8x128xf32>
    %cst_47 = arith.constant dense<0.000000e+00> : vector<8x128xf32>
    %186 = tpu.matmul %162, %8, %cst_47 {dimension_numbers = #tpu.dot_dimension_numbers<[1], [0], [0], [1], [0, 0, 1, 1], [], []>} : vector<8x32xf32>, vector<32x128xf32>, vector<8x128xf32> -> vector<8x128xf32>
    %187 = arith.addf %185, %186 : vector<8x128xf32>
    %188 = arith.negf %187 : vector<8x128xf32>
    %189 = math.exp %188 : vector<8x128xf32>
    %cst_48 = arith.constant 1.000000e+00 : f32
    %190 = vector.broadcast %cst_48 : f32 to vector<8x128xf32>
    %191 = arith.addf %190, %189 : vector<8x128xf32>
    %192 = arith.divf %190, %191 : vector<8x128xf32>
    %193 = vector.extract_strided_slice %192 {offsets = [0, 0], sizes = [8, 32], strides = [1, 1]} : vector<8x128xf32> to vector<8x32xf32>
    %194 = vector.extract_strided_slice %192 {offsets = [0, 32], sizes = [8, 32], strides = [1, 1]} : vector<8x128xf32> to vector<8x32xf32>
    %195 = vector.extract_strided_slice %192 {offsets = [0, 64], sizes = [8, 32], strides = [1, 1]} : vector<8x128xf32> to vector<8x32xf32>
    %cst_49 = arith.constant 2.000000e+00 : f32
    %196 = vector.broadcast %cst_49 : f32 to vector<8x32xf32>
    %197 = arith.mulf %196, %195 : vector<8x32xf32>
    %cst_50 = arith.constant 1.000000e+00 : f32
    %198 = vector.broadcast %cst_50 : f32 to vector<8x32xf32>
    %199 = arith.subf %197, %198 : vector<8x32xf32>
    %200 = vector.extract_strided_slice %192 {offsets = [0, 96], sizes = [8, 32], strides = [1, 1]} : vector<8x128xf32> to vector<8x32xf32>
    %201 = arith.mulf %194, %160 : vector<8x32xf32>
    %202 = arith.mulf %193, %199 : vector<8x32xf32>
    %203 = arith.addf %201, %202 : vector<8x32xf32>
    %204 = math.tanh %203 : vector<8x32xf32>
    %205 = arith.mulf %200, %204 : vector<8x32xf32>
    %206 = tpu.concatenate %205, %184 in 1 : vector<8x32xf32>, vector<8x32xf32> -> vector<8x64xf32>
    %cst_51 = arith.constant dense<0.000000e+00> : vector<8x128xf32>
    %207 = tpu.matmul %206, %0, %cst_51 {dimension_numbers = #tpu.dot_dimension_numbers<[1], [0], [0], [1], [0, 0, 1, 1], [], []>} : vector<8x64xf32>, vector<64x128xf32>, vector<8x128xf32> -> vector<8x128xf32>
    %208 = vector.broadcast %1 : vector<1x128xf32> to vector<8x128xf32>
    %209 = arith.addf %207, %208 : vector<8x128xf32>
    %210 = arith.negf %209 : vector<8x128xf32>
    %211 = math.exp %210 : vector<8x128xf32>
    %cst_52 = arith.constant 1.000000e+00 : f32
    %212 = vector.broadcast %cst_52 : f32 to vector<8x128xf32>
    %213 = arith.addf %212, %211 : vector<8x128xf32>
    %214 = arith.divf %212, %213 : vector<8x128xf32>
    %215 = vector.extract_strided_slice %214 {offsets = [0, 0], sizes = [8, 32], strides = [1, 1]} : vector<8x128xf32> to vector<8x32xf32>
    %216 = vector.extract_strided_slice %214 {offsets = [0, 32], sizes = [8, 32], strides = [1, 1]} : vector<8x128xf32> to vector<8x32xf32>
    %217 = vector.extract_strided_slice %214 {offsets = [0, 64], sizes = [8, 32], strides = [1, 1]} : vector<8x128xf32> to vector<8x32xf32>
    %cst_53 = arith.constant 2.000000e+00 : f32
    %218 = vector.broadcast %cst_53 : f32 to vector<8x32xf32>
    %219 = arith.mulf %218, %217 : vector<8x32xf32>
    %cst_54 = arith.constant 1.000000e+00 : f32
    %220 = vector.broadcast %cst_54 : f32 to vector<8x32xf32>
    %221 = arith.subf %219, %220 : vector<8x32xf32>
    %222 = vector.extract_strided_slice %214 {offsets = [0, 96], sizes = [8, 32], strides = [1, 1]} : vector<8x128xf32> to vector<8x32xf32>
    %223 = arith.mulf %216, %182 : vector<8x32xf32>
    %224 = arith.mulf %215, %221 : vector<8x32xf32>
    %225 = arith.addf %223, %224 : vector<8x32xf32>
    %226 = math.tanh %225 : vector<8x32xf32>
    %227 = arith.mulf %222, %226 : vector<8x32xf32>
    %228 = vector.extract_strided_slice %7 {offsets = [40, 0], sizes = [8, 128], strides = [1, 1]} : vector<64x128xf32> to vector<8x128xf32>
    %cst_55 = arith.constant dense<0.000000e+00> : vector<8x128xf32>
    %229 = tpu.matmul %205, %8, %cst_55 {dimension_numbers = #tpu.dot_dimension_numbers<[1], [0], [0], [1], [0, 0, 1, 1], [], []>} : vector<8x32xf32>, vector<32x128xf32>, vector<8x128xf32> -> vector<8x128xf32>
    %230 = arith.addf %228, %229 : vector<8x128xf32>
    %231 = arith.negf %230 : vector<8x128xf32>
    %232 = math.exp %231 : vector<8x128xf32>
    %cst_56 = arith.constant 1.000000e+00 : f32
    %233 = vector.broadcast %cst_56 : f32 to vector<8x128xf32>
    %234 = arith.addf %233, %232 : vector<8x128xf32>
    %235 = arith.divf %233, %234 : vector<8x128xf32>
    %236 = vector.extract_strided_slice %235 {offsets = [0, 0], sizes = [8, 32], strides = [1, 1]} : vector<8x128xf32> to vector<8x32xf32>
    %237 = vector.extract_strided_slice %235 {offsets = [0, 32], sizes = [8, 32], strides = [1, 1]} : vector<8x128xf32> to vector<8x32xf32>
    %238 = vector.extract_strided_slice %235 {offsets = [0, 64], sizes = [8, 32], strides = [1, 1]} : vector<8x128xf32> to vector<8x32xf32>
    %cst_57 = arith.constant 2.000000e+00 : f32
    %239 = vector.broadcast %cst_57 : f32 to vector<8x32xf32>
    %240 = arith.mulf %239, %238 : vector<8x32xf32>
    %cst_58 = arith.constant 1.000000e+00 : f32
    %241 = vector.broadcast %cst_58 : f32 to vector<8x32xf32>
    %242 = arith.subf %240, %241 : vector<8x32xf32>
    %243 = vector.extract_strided_slice %235 {offsets = [0, 96], sizes = [8, 32], strides = [1, 1]} : vector<8x128xf32> to vector<8x32xf32>
    %244 = arith.mulf %237, %203 : vector<8x32xf32>
    %245 = arith.mulf %236, %242 : vector<8x32xf32>
    %246 = arith.addf %244, %245 : vector<8x32xf32>
    %247 = math.tanh %246 : vector<8x32xf32>
    %248 = arith.mulf %243, %247 : vector<8x32xf32>
    %249 = tpu.concatenate %248, %227 in 1 : vector<8x32xf32>, vector<8x32xf32> -> vector<8x64xf32>
    %cst_59 = arith.constant dense<0.000000e+00> : vector<8x128xf32>
    %250 = tpu.matmul %249, %0, %cst_59 {dimension_numbers = #tpu.dot_dimension_numbers<[1], [0], [0], [1], [0, 0, 1, 1], [], []>} : vector<8x64xf32>, vector<64x128xf32>, vector<8x128xf32> -> vector<8x128xf32>
    %251 = vector.broadcast %1 : vector<1x128xf32> to vector<8x128xf32>
    %252 = arith.addf %250, %251 : vector<8x128xf32>
    %253 = arith.negf %252 : vector<8x128xf32>
    %254 = math.exp %253 : vector<8x128xf32>
    %cst_60 = arith.constant 1.000000e+00 : f32
    %255 = vector.broadcast %cst_60 : f32 to vector<8x128xf32>
    %256 = arith.addf %255, %254 : vector<8x128xf32>
    %257 = arith.divf %255, %256 : vector<8x128xf32>
    %258 = vector.extract_strided_slice %257 {offsets = [0, 0], sizes = [8, 32], strides = [1, 1]} : vector<8x128xf32> to vector<8x32xf32>
    %259 = vector.extract_strided_slice %257 {offsets = [0, 32], sizes = [8, 32], strides = [1, 1]} : vector<8x128xf32> to vector<8x32xf32>
    %260 = vector.extract_strided_slice %257 {offsets = [0, 64], sizes = [8, 32], strides = [1, 1]} : vector<8x128xf32> to vector<8x32xf32>
    %cst_61 = arith.constant 2.000000e+00 : f32
    %261 = vector.broadcast %cst_61 : f32 to vector<8x32xf32>
    %262 = arith.mulf %261, %260 : vector<8x32xf32>
    %cst_62 = arith.constant 1.000000e+00 : f32
    %263 = vector.broadcast %cst_62 : f32 to vector<8x32xf32>
    %264 = arith.subf %262, %263 : vector<8x32xf32>
    %265 = vector.extract_strided_slice %257 {offsets = [0, 96], sizes = [8, 32], strides = [1, 1]} : vector<8x128xf32> to vector<8x32xf32>
    %266 = arith.mulf %259, %225 : vector<8x32xf32>
    %267 = arith.mulf %258, %264 : vector<8x32xf32>
    %268 = arith.addf %266, %267 : vector<8x32xf32>
    %269 = math.tanh %268 : vector<8x32xf32>
    %270 = arith.mulf %265, %269 : vector<8x32xf32>
    %271 = vector.extract_strided_slice %7 {offsets = [48, 0], sizes = [8, 128], strides = [1, 1]} : vector<64x128xf32> to vector<8x128xf32>
    %cst_63 = arith.constant dense<0.000000e+00> : vector<8x128xf32>
    %272 = tpu.matmul %248, %8, %cst_63 {dimension_numbers = #tpu.dot_dimension_numbers<[1], [0], [0], [1], [0, 0, 1, 1], [], []>} : vector<8x32xf32>, vector<32x128xf32>, vector<8x128xf32> -> vector<8x128xf32>
    %273 = arith.addf %271, %272 : vector<8x128xf32>
    %274 = arith.negf %273 : vector<8x128xf32>
    %275 = math.exp %274 : vector<8x128xf32>
    %cst_64 = arith.constant 1.000000e+00 : f32
    %276 = vector.broadcast %cst_64 : f32 to vector<8x128xf32>
    %277 = arith.addf %276, %275 : vector<8x128xf32>
    %278 = arith.divf %276, %277 : vector<8x128xf32>
    %279 = vector.extract_strided_slice %278 {offsets = [0, 0], sizes = [8, 32], strides = [1, 1]} : vector<8x128xf32> to vector<8x32xf32>
    %280 = vector.extract_strided_slice %278 {offsets = [0, 32], sizes = [8, 32], strides = [1, 1]} : vector<8x128xf32> to vector<8x32xf32>
    %281 = vector.extract_strided_slice %278 {offsets = [0, 64], sizes = [8, 32], strides = [1, 1]} : vector<8x128xf32> to vector<8x32xf32>
    %cst_65 = arith.constant 2.000000e+00 : f32
    %282 = vector.broadcast %cst_65 : f32 to vector<8x32xf32>
    %283 = arith.mulf %282, %281 : vector<8x32xf32>
    %cst_66 = arith.constant 1.000000e+00 : f32
    %284 = vector.broadcast %cst_66 : f32 to vector<8x32xf32>
    %285 = arith.subf %283, %284 : vector<8x32xf32>
    %286 = vector.extract_strided_slice %278 {offsets = [0, 96], sizes = [8, 32], strides = [1, 1]} : vector<8x128xf32> to vector<8x32xf32>
    %287 = arith.mulf %280, %246 : vector<8x32xf32>
    %288 = arith.mulf %279, %285 : vector<8x32xf32>
    %289 = arith.addf %287, %288 : vector<8x32xf32>
    %290 = math.tanh %289 : vector<8x32xf32>
    %291 = arith.mulf %286, %290 : vector<8x32xf32>
    %292 = tpu.concatenate %291, %270 in 1 : vector<8x32xf32>, vector<8x32xf32> -> vector<8x64xf32>
    %cst_67 = arith.constant dense<0.000000e+00> : vector<8x128xf32>
    %293 = tpu.matmul %292, %0, %cst_67 {dimension_numbers = #tpu.dot_dimension_numbers<[1], [0], [0], [1], [0, 0, 1, 1], [], []>} : vector<8x64xf32>, vector<64x128xf32>, vector<8x128xf32> -> vector<8x128xf32>
    %294 = vector.broadcast %1 : vector<1x128xf32> to vector<8x128xf32>
    %295 = arith.addf %293, %294 : vector<8x128xf32>
    %296 = arith.negf %295 : vector<8x128xf32>
    %297 = math.exp %296 : vector<8x128xf32>
    %cst_68 = arith.constant 1.000000e+00 : f32
    %298 = vector.broadcast %cst_68 : f32 to vector<8x128xf32>
    %299 = arith.addf %298, %297 : vector<8x128xf32>
    %300 = arith.divf %298, %299 : vector<8x128xf32>
    %301 = vector.extract_strided_slice %300 {offsets = [0, 0], sizes = [8, 32], strides = [1, 1]} : vector<8x128xf32> to vector<8x32xf32>
    %302 = vector.extract_strided_slice %300 {offsets = [0, 32], sizes = [8, 32], strides = [1, 1]} : vector<8x128xf32> to vector<8x32xf32>
    %303 = vector.extract_strided_slice %300 {offsets = [0, 64], sizes = [8, 32], strides = [1, 1]} : vector<8x128xf32> to vector<8x32xf32>
    %cst_69 = arith.constant 2.000000e+00 : f32
    %304 = vector.broadcast %cst_69 : f32 to vector<8x32xf32>
    %305 = arith.mulf %304, %303 : vector<8x32xf32>
    %cst_70 = arith.constant 1.000000e+00 : f32
    %306 = vector.broadcast %cst_70 : f32 to vector<8x32xf32>
    %307 = arith.subf %305, %306 : vector<8x32xf32>
    %308 = vector.extract_strided_slice %300 {offsets = [0, 96], sizes = [8, 32], strides = [1, 1]} : vector<8x128xf32> to vector<8x32xf32>
    %309 = arith.mulf %302, %268 : vector<8x32xf32>
    %310 = arith.mulf %301, %307 : vector<8x32xf32>
    %311 = arith.addf %309, %310 : vector<8x32xf32>
    %312 = math.tanh %311 : vector<8x32xf32>
    %313 = arith.mulf %308, %312 : vector<8x32xf32>
    %314 = vector.extract_strided_slice %7 {offsets = [56, 0], sizes = [8, 128], strides = [1, 1]} : vector<64x128xf32> to vector<8x128xf32>
    %cst_71 = arith.constant dense<0.000000e+00> : vector<8x128xf32>
    %315 = tpu.matmul %291, %8, %cst_71 {dimension_numbers = #tpu.dot_dimension_numbers<[1], [0], [0], [1], [0, 0, 1, 1], [], []>} : vector<8x32xf32>, vector<32x128xf32>, vector<8x128xf32> -> vector<8x128xf32>
    %316 = arith.addf %314, %315 : vector<8x128xf32>
    %317 = arith.negf %316 : vector<8x128xf32>
    %318 = math.exp %317 : vector<8x128xf32>
    %cst_72 = arith.constant 1.000000e+00 : f32
    %319 = vector.broadcast %cst_72 : f32 to vector<8x128xf32>
    %320 = arith.addf %319, %318 : vector<8x128xf32>
    %321 = arith.divf %319, %320 : vector<8x128xf32>
    %322 = vector.extract_strided_slice %321 {offsets = [0, 0], sizes = [8, 32], strides = [1, 1]} : vector<8x128xf32> to vector<8x32xf32>
    %323 = vector.extract_strided_slice %321 {offsets = [0, 32], sizes = [8, 32], strides = [1, 1]} : vector<8x128xf32> to vector<8x32xf32>
    %324 = vector.extract_strided_slice %321 {offsets = [0, 64], sizes = [8, 32], strides = [1, 1]} : vector<8x128xf32> to vector<8x32xf32>
    %cst_73 = arith.constant 2.000000e+00 : f32
    %325 = vector.broadcast %cst_73 : f32 to vector<8x32xf32>
    %326 = arith.mulf %325, %324 : vector<8x32xf32>
    %cst_74 = arith.constant 1.000000e+00 : f32
    %327 = vector.broadcast %cst_74 : f32 to vector<8x32xf32>
    %328 = arith.subf %326, %327 : vector<8x32xf32>
    %329 = vector.extract_strided_slice %321 {offsets = [0, 96], sizes = [8, 32], strides = [1, 1]} : vector<8x128xf32> to vector<8x32xf32>
    %330 = arith.mulf %323, %289 : vector<8x32xf32>
    %331 = arith.mulf %322, %328 : vector<8x32xf32>
    %332 = arith.addf %330, %331 : vector<8x32xf32>
    %333 = math.tanh %332 : vector<8x32xf32>
    %334 = arith.mulf %329, %333 : vector<8x32xf32>
    %335 = tpu.concatenate %334, %313 in 1 : vector<8x32xf32>, vector<8x32xf32> -> vector<8x64xf32>
    %cst_75 = arith.constant dense<0.000000e+00> : vector<8x128xf32>
    %336 = tpu.matmul %335, %0, %cst_75 {dimension_numbers = #tpu.dot_dimension_numbers<[1], [0], [0], [1], [0, 0, 1, 1], [], []>} : vector<8x64xf32>, vector<64x128xf32>, vector<8x128xf32> -> vector<8x128xf32>
    %337 = vector.broadcast %1 : vector<1x128xf32> to vector<8x128xf32>
    %338 = arith.addf %336, %337 : vector<8x128xf32>
    %339 = arith.negf %338 : vector<8x128xf32>
    %340 = math.exp %339 : vector<8x128xf32>
    %cst_76 = arith.constant 1.000000e+00 : f32
    %341 = vector.broadcast %cst_76 : f32 to vector<8x128xf32>
    %342 = arith.addf %341, %340 : vector<8x128xf32>
    %343 = arith.divf %341, %342 : vector<8x128xf32>
    %344 = vector.extract_strided_slice %343 {offsets = [0, 0], sizes = [8, 32], strides = [1, 1]} : vector<8x128xf32> to vector<8x32xf32>
    %345 = vector.extract_strided_slice %343 {offsets = [0, 32], sizes = [8, 32], strides = [1, 1]} : vector<8x128xf32> to vector<8x32xf32>
    %346 = vector.extract_strided_slice %343 {offsets = [0, 64], sizes = [8, 32], strides = [1, 1]} : vector<8x128xf32> to vector<8x32xf32>
    %cst_77 = arith.constant 2.000000e+00 : f32
    %347 = vector.broadcast %cst_77 : f32 to vector<8x32xf32>
    %348 = arith.mulf %347, %346 : vector<8x32xf32>
    %cst_78 = arith.constant 1.000000e+00 : f32
    %349 = vector.broadcast %cst_78 : f32 to vector<8x32xf32>
    %350 = arith.subf %348, %349 : vector<8x32xf32>
    %351 = vector.extract_strided_slice %343 {offsets = [0, 96], sizes = [8, 32], strides = [1, 1]} : vector<8x128xf32> to vector<8x32xf32>
    %352 = arith.mulf %345, %311 : vector<8x32xf32>
    %353 = arith.mulf %344, %350 : vector<8x32xf32>
    %354 = arith.addf %352, %353 : vector<8x32xf32>
    %355 = math.tanh %354 : vector<8x32xf32>
    %356 = arith.mulf %351, %355 : vector<8x32xf32>
    %c0_79 = arith.constant 0 : index
    %c0_80 = arith.constant 0 : index
    %357 = vector.load %arg6[%c0_79, %c0_80] : memref<32x128xf32, #tpu.memory_space<vmem>>, vector<32x128xf32>
    %cst_81 = arith.constant dense<0.000000e+00> : vector<8x128xf32>
    %358 = tpu.matmul %356, %357, %cst_81 {dimension_numbers = #tpu.dot_dimension_numbers<[1], [0], [0], [1], [0, 0, 1, 1], [], []>} : vector<8x32xf32>, vector<32x128xf32>, vector<8x128xf32> -> vector<8x128xf32>
    %c0_82 = arith.constant 0 : index
    %c0_83 = arith.constant 0 : index
    %359 = vector.load %arg7[%c0_82, %c0_83] : memref<1x128xf32, #tpu.memory_space<vmem>>, vector<1x128xf32>
    %360 = vector.broadcast %359 : vector<1x128xf32> to vector<8x128xf32>
    %361 = arith.addf %358, %360 : vector<8x128xf32>
    %c0_84 = arith.constant 0 : index
    %c0_85 = arith.constant 0 : index
    %362 = vector.load %arg8[%c0_84, %c0_85] : memref<8x128xf32, #tpu.memory_space<vmem>>, vector<8x128xf32>
    tpu.vector_store %arg8[%c0_84, %c0_85], %361 {strides = array<i32>} : memref<8x128xf32, #tpu.memory_space<vmem>>, vector<8x128xf32>,
    return
  }
}

</mosaic_0001>

<bundles_post_ra>
// kernel: lstm_model_forward.1
= control target key start
LH: loop header
LB: loop body
LE: loop exit
PB: predicated region body
PF: predicated region fallthrough
CT: control target
= control target key end

     0   :  { %vm52_vm0 = vcmask 130048   ;;  %v1370_v7 = vmov 0.0   ;;  %s1371_s19 = smov 64   ;;  %s1372_s20 = smov 32   ;;  %vm122_vm5 = vcmask 261120   ;;  %vm193_vm6 = vcmask 523264   ;;  %s1806_s2 = inlined_call_operand.vmem [shape: f32[32,128], index: 2, kind: input, shape index: {}]   ;;  %s1807_s1 = inlined_call_operand.vmem [shape: f32[16,128], index: 1, kind: input, shape index: {}]   ;;  %s1808_s0 = inlined_call_operand.vmem [shape: f32[64,16], index: 0, kind: input, shape index: {}]   ;;  %s1809_s3 = inlined_call_operand.vmem [shape: f32[1,128], index: 3, kind: input, shape index: {}]   ;;  %s1810_s4 = inlined_call_operand.vmem [shape: f32[64,128], index: 4, kind: input, shape index: {}]   ;;  %s1811_s5 = inlined_call_operand.vmem [shape: f32[1,128], index: 5, kind: input, shape index: {}]   ;;  %s1812_s6 = inlined_call_operand.vmem [shape: f32[32,128], index: 6, kind: input, shape index: {}]   ;;  %s1813_s7 = inlined_call_operand.vmem [shape: f32[1,128], index: 7, kind: input, shape index: {}]   ;;  %s1814_s8 = inlined_call_operand.vmem [shape: f32[8,128], index: 8, kind: output, shape index: {}]  }
   0x1   :  { %v1421_v0 = vld [vmem:[%s1806_s2 + $0x18] sm:$0xff]  ;;  %v47_v1 = vld [vmem:[%s1807_s1 + $0x8] sm:$0xff]  ;;  %v1429_v2 = vld [vmem:[%s1806_s2 + $0x10] sm:$0xff] }
   0x2   :  { %138 = vmatpush.msra.mxu1 %v1421_v0  ;;  %91 = vmatpush.msra.mxu0 %v47_v1  ;;  %v46_v3 = vld [vmem:[%s1807_s1] sm:$0xff]  ;;  %v1441_v5 = vld [vmem:[%s1806_s2 + $0x8] sm:$0xff]  ;;  %v1475_v34 = vld [vmem:[%s1810_s4 + $0x38] sm:$0xff] }
   0x3   :  { %v38_v4 = vld [vmem:[%s1808_s0] sm:$0xff]  ;;  %269 = vmatpush.msra.mxu3 %v1421_v0  ;;  %v1480_v35 = vld [vmem:[%s1810_s4 + $0x30] sm:$0xff]  ;;  %205 = vmatpush.msra.mxu2 %v1475_v34  ;;  %v1487_v36 = vld [vmem:[%s1810_s4 + $0x28] sm:$0xff] }
   0x4   :  { %139 = vmatpush.msra.mxu1 %v1429_v2  ;;  %92 = vmatpush.msra.mxu0 %v46_v3  ;;  %v1449_v6 = vld [vmem:[%s1806_s2] sm:$0xff]  ;;  %v1503_v38 = vld [vmem:[%s1810_s4 + $0x18] sm:$0xff]  ;;  %v1511_v39 = vld [vmem:[%s1810_s4 + $0x10] sm:$0xff] }
   0x5   :  { %1210 = vmatmul.msk.f32.vlgmr.msra.gmra.mxu0 %vm52_vm0, %v38_v4  ;;  %270 = vmatpush.msra.mxu3 %v1429_v2  ;;  %v1463_v8 = vld [vmem:[%s1809_s3] ss:$0 sm:$0xff]  ;;  %v1519_v40 = vld [vmem:[%s1810_s4 + $0x8] sm:$0xff] }
   0x6   :  { %140 = vmatpush.msra.mxu1 %v1441_v5  ;;  %1122 = vmatpush.msrb.mxu0 %v1475_v34  ;;  %v1495_v37 = vld [vmem:[%s1810_s4 + $0x20] sm:$0xff]  ;;  %v39_v44 = vld [vmem:[%s1808_s0 + $0x8] sm:$0xff] }
   0x7   :  { %271 = vmatpush.msra.mxu3 %v1441_v5  ;;  %206 = vmatpush.msra.mxu2 %v1480_v35  ;;  %v1532_v43 = vld [vmem:[%s1810_s4] sm:$0xff] }
   0x8   :  { %141 = vmatpush.msra.mxu1 %v1449_v6  ;;  %1123 = vmatpush.msrb.mxu0 %v1480_v35  ;;  %v1576_v49 = vld [vmem:[%s1811_s5] ss:$0 sm:$0xff] }
   0x9   :  { %142 = vmatmul.f32.vlgmr.msra.gmra.mxu1 %v1370_v7  ;;  %272 = vmatpush.msra.mxu3 %v1449_v6 }
   0xa   :  { %336 = vmatpush.msrb.mxu1 %v1475_v34  ;;  %207 = vmatpush.msra.mxu2 %v1487_v36 }
   0xb   :  { %400 = vmatpush.msrb.mxu3 %v1421_v0  ;;  %1124 = vmatpush.msrb.mxu0 %v1487_v36 }
   0xc   :  { %337 = vmatpush.msrb.mxu1 %v1480_v35  ;;  %208 = vmatpush.msra.mxu2 %v1495_v37 }
   0xd   :  { %401 = vmatpush.msrb.mxu3 %v1429_v2  ;;  %1125 = vmatpush.msrb.mxu0 %v1495_v37 }
   0xe   :  { %338 = vmatpush.msrb.mxu1 %v1487_v36  ;;  %209 = vmatpush.msra.mxu2 %v1503_v38 }
   0xf   :  { %402 = vmatpush.msrb.mxu3 %v1441_v5  ;;  %1126 = vmatpush.msrb.mxu0 %v1503_v38 }
  0x10   :  { %339 = vmatpush.msrb.mxu1 %v1495_v37  ;;  %210 = vmatpush.msra.mxu2 %v1511_v39 }
  0x11   :  { %403 = vmatpush.msrb.mxu3 %v1449_v6  ;;  %1127 = vmatpush.msrb.mxu0 %v1511_v39 }
  0x12   :  { %340 = vmatpush.msrb.mxu1 %v1503_v38  ;;  %211 = vmatpush.msra.mxu2 %v1519_v40 }
  0x13   :  { %1128 = vmatpush.msrb.mxu0 %v1519_v40 }
  0x14   :  { %341 = vmatpush.msrb.mxu1 %v1511_v39  ;;  %212 = vmatpush.msra.mxu2 %v1532_v43 }
  0x15   :  { %1211 = vmatmul.msk.f32.gmra.mxu0 %vm52_vm0, %v39_v44 }
  0x16   :  { %342 = vmatpush.msrb.mxu1 %v1519_v40  ;;  %467 = vmatpush.msrb.mxu2 %v1475_v34 }
  0x17   :  { %1129 = vmatpush.msrb.mxu0 %v1532_v43 }
  0x18   :  { %343 = vmatpush.msrb.mxu1 %v1532_v43  ;;  %468 = vmatpush.msrb.mxu2 %v1480_v35 }
  0x1a   :  { %598 = vmatpush.msra.mxu1 %v1475_v34  ;;  %469 = vmatpush.msrb.mxu2 %v1487_v36 }
  0x1c   :  { %599 = vmatpush.msra.mxu1 %v1480_v35  ;;  %470 = vmatpush.msrb.mxu2 %v1495_v37 }
  0x1e   :  { %600 = vmatpush.msra.mxu1 %v1487_v36  ;;  %471 = vmatpush.msrb.mxu2 %v1503_v38 }
  0x20   :  { %601 = vmatpush.msra.mxu1 %v1495_v37  ;;  %472 = vmatpush.msrb.mxu2 %v1511_v39 }
  0x22   :  { %602 = vmatpush.msra.mxu1 %v1503_v38  ;;  %473 = vmatpush.msrb.mxu2 %v1519_v40 }
  0x24   :  { %603 = vmatpush.msra.mxu1 %v1511_v39  ;;  %474 = vmatpush.msrb.mxu2 %v1532_v43 }
  0x26   :  { %604 = vmatpush.msra.mxu1 %v1519_v40 }
  0x28   :  { %605 = vmatpush.msra.mxu1 %v1532_v43 }
  0x82   :  { %v94_v9 = vpop.f32.mrf.mxu0 }
  0x83   :  { %v95_v10 = vadd.f32 %v1463_v8, %v94_v9 }
  0x86   :  { %v143_v11 = vpop.f32.mrf.mxu1 }
  0x87   :  { %v146_v12 = vadd.f32 %v143_v11, %v95_v10 }
  0x89   :  { %v1218_v13 = vmul.f32 -1.442695, %v146_v12 }
  0x8b   :  { %1272 = vpow2.f32 %v1218_v13 }
  0x91   :  { %v1273_v14 = vpop.eup %1272 }
  0x92   :  { %v150_v15 = vadd.f32 1.0, %v1273_v14  ;;  %v97_v47 = vpop.f32.mrf.mxu0 }
  0x93   :  { %v98_v48 = vadd.f32 %v1463_v8, %v97_v47 }
  0x94   :  { %1274 = vrcp.f32 %v150_v15  ;;  %v162_v19 = vand.u32 2147483648, %v150_v15  ;;  %v160_v21 = vand.u32 2147483647, %v150_v15  ;;  %vm156_vm2 = vweird.f32 %v150_v15 }
  0x96   :  { %v163_v23 = vor.u32 1.1754944e-38, %v162_v19  ;;  %vm161_vm4 = vcmp.eq.f32.partialorder %v160_v21, 8.507059e+37 }
  0x9a   :  { %v1275_v16 = vpop.eup %1274 }
  0x9b   :  { %v152_v17 = vmul.f32 %v1275_v16, %v150_v15  ;;  %vm157_vm1 = vweird.f32 %v1275_v16 }
  0x9c   :  { %vm158_vm3 = vmor %vm156_vm2, %vm157_vm1 }
  0x9d   :  { %v153_v18 = vsub.f32 1.0, %v152_v17 }
  0x9f   :  { %v154_v20 = vmul.f32 %v1275_v16, %v153_v18 }
  0xa1   :  { %v155_v22 = vadd.f32 %v1275_v16, %v154_v20 }
  0xa3   :  { %v159_v24 = vsel %vm158_vm3, %v1275_v16, %v155_v22 }
  0xa4   :  { %v164_v25 = vsel %vm161_vm4, %v163_v23, %v159_v24 }
  0xa5   :  { %v166_v26 = vmul.f32 2.0, %v164_v25  ;;  %v168_v30 = vmul.f32 0.0, %v164_v25 }
  0xa7   :  { %v1219_v27 = vadd.f32 -1.0, %v166_v26 }
  0xa9   :  { %170 = vrot.lane.b32.xlu0 %v1219_v27, %s1371_s19 }
 0x11b   :  { %v171_v28 = vpop.permute.xlu0 %170 }
 0x11c   :  { %v173_v29 = vmul.f32 %v171_v28, %v164_v25 }
 0x11e   :  { %175 = vrot.lane.b32.xlu0 %v173_v29, %s1372_s20 }
 0x190   :  { %v176_v31 = vpop.permute.xlu0 %175 }
 0x191   :  { %v1468_v32 = vadd.f32 %v176_v31, %v168_v30 }
 0x193   :  { %1276 = vtanh.f32 %v1468_v32 }
 0x199   :  { %v1277_v33 = vpop.eup %1276 }
 0x19a   :  { %181 = vrot.lane.b32.xlu1 %v1277_v33, %s1371_s19 }
 0x20c   :  { %v182_v41 = vpop.permute.xlu1 %181 }
 0x20d   :  { %v184_v42 = vmul.f32 %v182_v41, %v164_v25 }
 0x20f   :  { %186 = vrot.lane.b32.xlu1 %v184_v42, %s1372_s20 }
 0x281   :  { %v187_v45 = vpop.permute.xlu1 %186 }
 0x282   :  { %1223 = vmatmul.msk.f32.vlgmr.msra.gmra.mxu3 %vm122_vm5, %v187_v45  ;;  %v189_v46 = vsel %vm122_vm5, %v187_v45, 0.0 }
 0x283   :  { %1220 = vmatmul.msk.f32.vlgmr.msra.gmra.mxu2 %vm193_vm6, %v189_v46  ;;  %531 = vmatpush.msra.mxu3 %v1421_v0 }
 0x284   :  { %729 = vmatpush.msra.mxu2 %v1475_v34 }
 0x285   :  { %532 = vmatpush.msra.mxu3 %v1429_v2 }
 0x286   :  { %730 = vmatpush.msra.mxu2 %v1480_v35 }
 0x287   :  { %533 = vmatpush.msra.mxu3 %v1441_v5 }
 0x288   :  { %731 = vmatpush.msra.mxu2 %v1487_v36 }
 0x289   :  { %534 = vmatpush.msra.mxu3 %v1449_v6 }
 0x28a   :  { %732 = vmatpush.msra.mxu2 %v1495_v37 }
 0x28c   :  { %733 = vmatpush.msra.mxu2 %v1503_v38 }
 0x28e   :  { %734 = vmatpush.msra.mxu2 %v1511_v39 }
 0x290   :  { %735 = vmatpush.msra.mxu2 %v1519_v40 }
 0x292   :  { %736 = vmatpush.msra.mxu2 %v1532_v43 }
 0x305   :  { %v274_v50 = vpop.f32.mrf.mxu3 }
 0x306   :  { %v277_v51 = vadd.f32 %v274_v50, %v98_v48  ;;  %v214_v52 = vpop.f32.mrf.mxu2  ;;  %v40_v50 = vld [vmem:[%s1808_s0 + $0x10] sm:$0xff] }
 0x307   :  { %v215_v53 = vadd.f32 %v1576_v49, %v214_v52  ;;  %1212 = vmatmul.msk.f32.gmra.mxu0 %vm52_vm0, %v40_v50 }
 0x308   :  { %v1224_v54 = vmul.f32 -1.442695, %v277_v51 }
 0x309   :  { %v1221_v55 = vmul.f32 -1.442695, %v215_v53 }
 0x30a   :  { %1278 = vpow2.f32 %v1224_v54 }
 0x30b   :  { %1280 = vpow2.f32 %v1221_v55 }
 0x310   :  { %v1279_v56 = vpop.eup %1278 }
 0x311   :  { %v1281_v57 = vpop.eup %1280  ;;  %v281_v58 = vadd.f32 1.0, %v1279_v56 }
 0x312   :  { %v220_v59 = vadd.f32 1.0, %v1281_v57 }
 0x313   :  { %1282 = vrcp.f32 %v281_v58  ;;  %v293_v4 = vand.u32 2147483648, %v281_v58  ;;  %v291_v9 = vand.u32 2147483647, %v281_v58  ;;  %vm287_vm8 = vweird.f32 %v281_v58 }
 0x314   :  { %1284 = vrcp.f32 %v220_v59  ;;  %v232_v14 = vand.u32 2147483648, %v220_v59  ;;  %vm226_vm12 = vweird.f32 %v220_v59  ;;  %v230_v16 = vand.u32 2147483647, %v220_v59 }
 0x315   :  { %v294_v12 = vor.u32 1.1754944e-38, %v293_v4  ;;  %vm292_vm11 = vcmp.eq.f32.partialorder %v291_v9, 8.507059e+37 }
 0x316   :  { %v233_v20 = vor.u32 1.1754944e-38, %v232_v14  ;;  %vm231_vm14 = vcmp.eq.f32.partialorder %v230_v16, 8.507059e+37 }
 0x319   :  { %v1283_v60 = vpop.eup %1282 }
 0x31a   :  { %v1285_v61 = vpop.eup %1284  ;;  %v283_v62 = vmul.f32 %v1283_v60, %v281_v58  ;;  %vm288_vm7 = vweird.f32 %v1283_v60 }
 0x31b   :  { %v222_v63 = vmul.f32 %v1285_v61, %v220_v59  ;;  %vm227_vm9 = vweird.f32 %v1285_v61  ;;  %vm289_vm10 = vmor %vm287_vm8, %vm288_vm7 }
 0x31c   :  { %v284_v1 = vsub.f32 1.0, %v283_v62  ;;  %vm228_vm13 = vmor %vm226_vm12, %vm227_vm9 }
 0x31d   :  { %v223_v3 = vsub.f32 1.0, %v222_v63 }
 0x31e   :  { %v285_v7 = vmul.f32 %v1283_v60, %v284_v1 }
 0x31f   :  { %v224_v10 = vmul.f32 %v1285_v61, %v223_v3 }
 0x320   :  { %v286_v11 = vadd.f32 %v1283_v60, %v285_v7 }
 0x321   :  { %v225_v13 = vadd.f32 %v1285_v61, %v224_v10 }
 0x322   :  { %v290_v15 = vsel %vm289_vm10, %v1283_v60, %v286_v11 }
 0x323   :  { %v295_v17 = vsel %vm292_vm11, %v294_v12, %v290_v15  ;;  %v229_v19 = vsel %vm228_vm13, %v1285_v61, %v225_v13 }
 0x324   :  { %v297_v18 = vmul.f32 2.0, %v295_v17  ;;  %v234_v22 = vsel %vm231_vm14, %v233_v20, %v229_v19  ;;  %v299_v29 = vmul.f32 %v295_v17, %v1468_v32 }
 0x325   :  { %v236_v23 = vmul.f32 2.0, %v234_v22  ;;  %v238_v33 = vmul.f32 0.0, %v234_v22 }
 0x326   :  { %v1225_v21 = vadd.f32 -1.0, %v297_v18 }
 0x327   :  { %v1222_v24 = vadd.f32 -1.0, %v236_v23 }
 0x328   :  { %301 = vrot.lane.b32.xlu2 %v1225_v21, %s1371_s19 }
 0x330   :  { %240 = vrot.lane.b32.xlu2 %v1222_v24, %s1371_s19 }
 0x382   :  { %v302_v25 = vpop.permute.xlu2 %301 }
 0x383   :  { %v304_v26 = vmul.f32 %v302_v25, %v295_v17 }
 0x384   :  { %v100_v54 = vpop.f32.mrf.mxu0 }
 0x385   :  { %306 = vrot.lane.b32.xlu0 %v304_v26, %s1372_s20  ;;  %v101_v55 = vadd.f32 %v1463_v8, %v100_v54 }
 0x38a   :  { %v241_v27 = vpop.permute.xlu2 %240 }
 0x38b   :  { %v243_v28 = vmul.f32 %v241_v27, %v234_v22 }
 0x38d   :  { %245 = vrot.lane.b32.xlu1 %v243_v28, %s1372_s20 }
 0x3f7   :  { %v307_v30 = vpop.permute.xlu0 %306 }
 0x3f8   :  { %v1584_v31 = vadd.f32 %v307_v30, %v299_v29 }
 0x3fa   :  { %1286 = vtanh.f32 %v1584_v31 }
 0x3ff   :  { %v246_v41 = vpop.permute.xlu1 %245 }
 0x400   :  { %v1287_v42 = vpop.eup %1286  ;;  %v1587_v44 = vadd.f32 %v246_v41, %v238_v33 }
 0x401   :  { %312 = vrot.lane.b32.xlu2 %v1287_v42, %s1371_s19 }
 0x402   :  { %1288 = vtanh.f32 %v1587_v44 }
 0x408   :  { %v1289_v45 = vpop.eup %1288 }
 0x409   :  { %251 = vrot.lane.b32.xlu0 %v1289_v45, %s1371_s19 }
 0x45b   :  { %v313_v46 = vpop.permute.xlu2 %312 }
 0x45c   :  { %v315_v47 = vmul.f32 %v313_v46, %v295_v17 }
 0x45e   :  { %317 = vrot.lane.b32.xlu1 %v315_v47, %s1372_s20 }
 0x47b   :  { %v252_v32 = vpop.permute.xlu0 %251 }
 0x47c   :  { %v254_v48 = vmul.f32 %v252_v32, %v234_v22 }
 0x47e   :  { %321 = vrot.lane.b32.xlu2 %v254_v48, %s1371_s19 }
 0x4d0   :  { %v318_v51 = vpop.permute.xlu1 %317 }
 0x4d1   :  { %1229 = vmatmul.msk.f32.vlgmr.msrb.gmra.mxu3 %vm122_vm5, %v318_v51 }
 0x4d2   :  { %662 = vmatpush.msrb.mxu3 %v1421_v0 }
 0x4d4   :  { %663 = vmatpush.msrb.mxu3 %v1429_v2 }
 0x4d6   :  { %664 = vmatpush.msrb.mxu3 %v1441_v5 }
 0x4d8   :  { %v322_v52 = vpop.permute.xlu2 %321  ;;  %665 = vmatpush.msrb.mxu3 %v1449_v6 }
 0x4d9   :  { %v324_v53 = vsel %vm122_vm5, %v318_v51, %v322_v52 }
 0x4da   :  { %1226 = vmatmul.msk.f32.vlgmr.msrb.gmra.mxu1 %vm193_vm6, %v324_v53 }
 0x4db   :  { %860 = vmatpush.msrb.mxu1 %v1475_v34 }
 0x4dd   :  { %861 = vmatpush.msrb.mxu1 %v1480_v35 }
 0x4df   :  { %862 = vmatpush.msrb.mxu1 %v1487_v36 }
 0x4e1   :  { %863 = vmatpush.msrb.mxu1 %v1495_v37 }
 0x4e3   :  { %864 = vmatpush.msrb.mxu1 %v1503_v38 }
 0x4e5   :  { %865 = vmatpush.msrb.mxu1 %v1511_v39 }
 0x4e7   :  { %866 = vmatpush.msrb.mxu1 %v1519_v40 }
 0x4e9   :  { %867 = vmatpush.msrb.mxu1 %v1532_v43 }
 0x554   :  { %v405_v56 = vpop.f32.mrf.mxu3 }
 0x555   :  { %v408_v57 = vadd.f32 %v405_v56, %v101_v55 }
 0x557   :  { %v1230_v58 = vmul.f32 -1.442695, %v408_v57  ;;  %v345_v59 = vpop.f32.mrf.mxu1 }
 0x558   :  { %v346_v60 = vadd.f32 %v1576_v49, %v345_v59 }
 0x559   :  { %1290 = vpow2.f32 %v1230_v58 }
 0x55a   :  { %v1227_v61 = vmul.f32 -1.442695, %v346_v60 }
 0x55c   :  { %1292 = vpow2.f32 %v1227_v61 }
 0x55f   :  { %v1291_v62 = vpop.eup %1290 }
 0x560   :  { %v412_v63 = vadd.f32 1.0, %v1291_v62 }
 0x562   :  { %v1293_v1 = vpop.eup %1292  ;;  %1294 = vrcp.f32 %v412_v63  ;;  %v424_v12 = vand.u32 2147483648, %v412_v63  ;;  %v422_v14 = vand.u32 2147483647, %v412_v63  ;;  %vm418_vm1 = vweird.f32 %v412_v63 }
 0x563   :  { %v351_v3 = vadd.f32 1.0, %v1293_v1 }
 0x564   :  { %v425_v18 = vor.u32 1.1754944e-38, %v424_v12  ;;  %vm423_vm4 = vcmp.eq.f32.partialorder %v422_v14, 8.507059e+37 }
 0x565   :  { %1296 = vrcp.f32 %v351_v3  ;;  %v363_v17 = vand.u32 2147483648, %v351_v3  ;;  %v361_v20 = vand.u32 2147483647, %v351_v3  ;;  %vm357_vm7 = vweird.f32 %v351_v3 }
 0x567   :  { %v364_v25 = vor.u32 1.1754944e-38, %v363_v17  ;;  %vm362_vm9 = vcmp.eq.f32.partialorder %v361_v20, 8.507059e+37 }
 0x568   :  { %v1295_v4 = vpop.eup %1294 }
 0x569   :  { %v414_v7 = vmul.f32 %v1295_v4, %v412_v63  ;;  %vm419_vm15 = vweird.f32 %v1295_v4 }
 0x56a   :  { %vm420_vm2 = vmor %vm418_vm1, %vm419_vm15 }
 0x56b   :  { %v1297_v9 = vpop.eup %1296  ;;  %v415_v10 = vsub.f32 1.0, %v414_v7 }
 0x56c   :  { %v353_v11 = vmul.f32 %v1297_v9, %v351_v3  ;;  %vm358_vm3 = vweird.f32 %v1297_v9 }
 0x56d   :  { %v416_v13 = vmul.f32 %v1295_v4, %v415_v10  ;;  %vm359_vm8 = vmor %vm357_vm7, %vm358_vm3 }
 0x56e   :  { %v354_v15 = vsub.f32 1.0, %v353_v11 }
 0x56f   :  { %v417_v16 = vadd.f32 %v1295_v4, %v416_v13 }
 0x570   :  { %v355_v19 = vmul.f32 %v1297_v9, %v354_v15 }
 0x571   :  { %v421_v21 = vsel %vm420_vm2, %v1295_v4, %v417_v16 }
 0x572   :  { %v426_v22 = vsel %vm423_vm4, %v425_v18, %v421_v21  ;;  %v356_v23 = vadd.f32 %v1297_v9, %v355_v19 }
 0x573   :  { %v428_v24 = vmul.f32 2.0, %v426_v22  ;;  %v430_v46 = vmul.f32 %v426_v22, %v1584_v31 }
 0x574   :  { %v360_v26 = vsel %vm359_vm8, %v1297_v9, %v356_v23 }
 0x575   :  { %v1231_v27 = vadd.f32 -1.0, %v428_v24  ;;  %v365_v28 = vsel %vm362_vm9, %v364_v25, %v360_v26 }
 0x576   :  { %v367_v29 = vmul.f32 2.0, %v365_v28  ;;  %v369_v50 = vmul.f32 %v365_v28, %v1587_v44  ;;  %v41_v44 = vld [vmem:[%s1808_s0 + $0x18] sm:$0xff] }
 0x577   :  { %432 = vrot.lane.b32.xlu0 %v1231_v27, %s1371_s19  ;;  %1213 = vmatmul.msk.f32.gmra.mxu0 %vm52_vm0, %v41_v44 }
 0x578   :  { %v1228_v30 = vadd.f32 -1.0, %v367_v29 }
 0x57a   :  { %371 = vrot.lane.b32.xlu1 %v1228_v30, %s1371_s19 }
 0x5e9   :  { %v433_v33 = vpop.permute.xlu0 %432 }
 0x5ea   :  { %v435_v41 = vmul.f32 %v433_v33, %v426_v22 }
 0x5ec   :  { %437 = vrot.lane.b32.xlu2 %v435_v41, %s1372_s20  ;;  %v372_v42 = vpop.permute.xlu1 %371 }
 0x5ed   :  { %v374_v45 = vmul.f32 %v372_v42, %v365_v28 }
 0x5ef   :  { %376 = vrot.lane.b32.xlu0 %v374_v45, %s1372_s20 }
 0x5f4   :  { %v103_v60 = vpop.f32.mrf.mxu0 }
 0x5f5   :  { %v104_v61 = vadd.f32 %v1463_v8, %v103_v60 }
 0x646   :  { %v438_v47 = vpop.permute.xlu2 %437 }
 0x647   :  { %v1620_v32 = vadd.f32 %v438_v47, %v430_v46 }
 0x649   :  { %1298 = vtanh.f32 %v1620_v32 }
 0x64f   :  { %v1299_v48 = vpop.eup %1298 }
 0x650   :  { %443 = vrot.lane.b32.xlu1 %v1299_v48, %s1371_s19 }
 0x661   :  { %v377_v51 = vpop.permute.xlu0 %376 }
 0x662   :  { %v1625_v52 = vadd.f32 %v377_v51, %v369_v50 }
 0x664   :  { %1300 = vtanh.f32 %v1625_v52 }
 0x66a   :  { %v1301_v53 = vpop.eup %1300 }
 0x66b   :  { %382 = vrot.lane.b32.xlu2 %v1301_v53, %s1371_s19 }
 0x6c2   :  { %v444_v54 = vpop.permute.xlu1 %443 }
 0x6c3   :  { %v446_v31 = vmul.f32 %v444_v54, %v426_v22 }
 0x6c5   :  { %448 = vrot.lane.b32.xlu0 %v446_v31, %s1372_s20  ;;  %v383_v55 = vpop.permute.xlu2 %382 }
 0x6c6   :  { %v385_v56 = vmul.f32 %v383_v55, %v365_v28 }
 0x6c8   :  { %452 = vrot.lane.b32.xlu1 %v385_v56, %s1371_s19 }
 0x737   :  { %v449_v57 = vpop.permute.xlu0 %448 }
 0x738   :  { %1235 = vmatmul.msk.f32.vlgmr.msra.gmra.mxu3 %vm122_vm5, %v449_v57 }
 0x739   :  { %793 = vmatpush.msra.mxu3 %v1421_v0 }
 0x73a   :  { %v453_v58 = vpop.permute.xlu1 %452 }
 0x73b   :  { %v455_v59 = vsel %vm122_vm5, %v449_v57, %v453_v58  ;;  %794 = vmatpush.msra.mxu3 %v1429_v2 }
 0x73c   :  { %1232 = vmatmul.msk.f32.vlgmr.msrb.gmra.mxu2 %vm193_vm6, %v455_v59 }
 0x73d   :  { %795 = vmatpush.msra.mxu3 %v1441_v5  ;;  %991 = vmatpush.msrb.mxu2 %v1475_v34 }
 0x73f   :  { %796 = vmatpush.msra.mxu3 %v1449_v6  ;;  %992 = vmatpush.msrb.mxu2 %v1480_v35 }
 0x741   :  { %993 = vmatpush.msrb.mxu2 %v1487_v36 }
 0x743   :  { %994 = vmatpush.msrb.mxu2 %v1495_v37 }
 0x745   :  { %995 = vmatpush.msrb.mxu2 %v1503_v38 }
 0x747   :  { %996 = vmatpush.msrb.mxu2 %v1511_v39 }
 0x749   :  { %997 = vmatpush.msrb.mxu2 %v1519_v40 }
 0x74b   :  { %998 = vmatpush.msrb.mxu2 %v1532_v43 }
 0x7bb   :  { %v536_v34 = vpop.f32.mrf.mxu3 }
 0x7bc   :  { %v539_v62 = vadd.f32 %v536_v34, %v104_v61 }
 0x7be   :  { %v1236_v63 = vmul.f32 -1.442695, %v539_v62 }
 0x7bf   :  { %v476_v1 = vpop.f32.mrf.mxu2 }
 0x7c0   :  { %1302 = vpow2.f32 %v1236_v63  ;;  %v477_v35 = vadd.f32 %v1576_v49, %v476_v1 }
 0x7c2   :  { %v1233_v36 = vmul.f32 -1.442695, %v477_v35 }
 0x7c4   :  { %1304 = vpow2.f32 %v1233_v36 }
 0x7c6   :  { %v1303_v37 = vpop.eup %1302 }
 0x7c7   :  { %v543_v38 = vadd.f32 1.0, %v1303_v37 }
 0x7c9   :  { %1306 = vrcp.f32 %v543_v38  ;;  %v553_v9 = vand.u32 2147483647, %v543_v38  ;;  %v555_v10 = vand.u32 2147483648, %v543_v38  ;;  %vm549_vm11 = vweird.f32 %v543_v38 }
 0x7ca   :  { %v1305_v39 = vpop.eup %1304 }
 0x7cb   :  { %v482_v3 = vadd.f32 1.0, %v1305_v39  ;;  %vm554_vm13 = vcmp.eq.f32.partialorder %v553_v9, 8.507059e+37  ;;  %v556_v15 = vor.u32 1.1754944e-38, %v555_v10 }
 0x7cd   :  { %1308 = vrcp.f32 %v482_v3  ;;  %v494_v16 = vand.u32 2147483648, %v482_v3  ;;  %v492_v19 = vand.u32 2147483647, %v482_v3  ;;  %vm488_vm15 = vweird.f32 %v482_v3 }
 0x7cf   :  { %v1307_v40 = vpop.eup %1306  ;;  %v495_v23 = vor.u32 1.1754944e-38, %v494_v16  ;;  %vm493_vm2 = vcmp.eq.f32.partialorder %v492_v19, 8.507059e+37 }
 0x7d0   :  { %v545_v43 = vmul.f32 %v1307_v40, %v543_v38  ;;  %vm550_vm10 = vweird.f32 %v1307_v40 }
 0x7d1   :  { %vm551_vm12 = vmor %vm549_vm11, %vm550_vm10 }
 0x7d2   :  { %v546_v4 = vsub.f32 1.0, %v545_v43 }
 0x7d3   :  { %v1309_v7 = vpop.eup %1308 }
 0x7d4   :  { %v484_v11 = vmul.f32 %v1309_v7, %v482_v3  ;;  %v547_v12 = vmul.f32 %v1307_v40, %v546_v4  ;;  %vm489_vm14 = vweird.f32 %v1309_v7 }
 0x7d5   :  { %vm490_vm1 = vmor %vm488_vm15, %vm489_vm14 }
 0x7d6   :  { %v485_v13 = vsub.f32 1.0, %v484_v11  ;;  %v548_v14 = vadd.f32 %v1307_v40, %v547_v12 }
 0x7d8   :  { %v552_v17 = vsel %vm551_vm12, %v1307_v40, %v548_v14  ;;  %v486_v18 = vmul.f32 %v1309_v7, %v485_v13 }
 0x7d9   :  { %v557_v20 = vsel %vm554_vm13, %v556_v15, %v552_v17 }
 0x7da   :  { %v559_v21 = vmul.f32 2.0, %v557_v20  ;;  %v487_v22 = vadd.f32 %v1309_v7, %v486_v18  ;;  %v561_v42 = vmul.f32 %v557_v20, %v1620_v32 }
 0x7dc   :  { %v1237_v24 = vadd.f32 -1.0, %v559_v21  ;;  %v491_v25 = vsel %vm490_vm1, %v1309_v7, %v487_v22 }
 0x7dd   :  { %v496_v26 = vsel %vm493_vm2, %v495_v23, %v491_v25 }
 0x7de   :  { %563 = vrot.lane.b32.xlu2 %v1237_v24, %s1371_s19  ;;  %v498_v27 = vmul.f32 2.0, %v496_v26  ;;  %v500_v47 = vmul.f32 %v496_v26, %v1625_v52  ;;  %v42_v52 = vld [vmem:[%s1808_s0 + $0x20] sm:$0xff] }
 0x7df   :  { %1214 = vmatmul.msk.f32.gmra.mxu0 %vm52_vm0, %v42_v52 }
 0x7e0   :  { %v1234_v28 = vadd.f32 -1.0, %v498_v27 }
 0x7e2   :  { %502 = vrot.lane.b32.xlu0 %v1234_v28, %s1371_s19 }
 0x838   :  { %v564_v29 = vpop.permute.xlu2 %563 }
 0x839   :  { %v566_v30 = vmul.f32 %v564_v29, %v557_v20 }
 0x83b   :  { %568 = vrot.lane.b32.xlu1 %v566_v30, %s1372_s20 }
 0x854   :  { %v503_v33 = vpop.permute.xlu0 %502 }
 0x855   :  { %v505_v41 = vmul.f32 %v503_v33, %v496_v26 }
 0x857   :  { %507 = vrot.lane.b32.xlu2 %v505_v41, %s1372_s20 }
 0x85c   :  { %v106_v58 = vpop.f32.mrf.mxu0 }
 0x85d   :  { %v107_v59 = vadd.f32 %v1463_v8, %v106_v58 }
 0x8ad   :  { %v569_v45 = vpop.permute.xlu1 %568 }
 0x8ae   :  { %v1657_v46 = vadd.f32 %v569_v45, %v561_v42 }
 0x8b0   :  { %1310 = vtanh.f32 %v1657_v46 }
 0x8b1   :  { %v508_v48 = vpop.permute.xlu2 %507 }
 0x8b2   :  { %v1661_v50 = vadd.f32 %v508_v48, %v500_v47 }
 0x8b4   :  { %1312 = vtanh.f32 %v1661_v50 }
 0x8b6   :  { %v1311_v51 = vpop.eup %1310 }
 0x8b7   :  { %574 = vrot.lane.b32.xlu0 %v1311_v51, %s1371_s19 }
 0x8ba   :  { %v1313_v53 = vpop.eup %1312 }
 0x8bb   :  { %513 = vrot.lane.b32.xlu1 %v1313_v53, %s1371_s19 }
 0x929   :  { %v575_v54 = vpop.permute.xlu0 %574 }
 0x92a   :  { %v577_v32 = vmul.f32 %v575_v54, %v557_v20 }
 0x92c   :  { %579 = vrot.lane.b32.xlu2 %v577_v32, %s1372_s20 }
 0x92d   :  { %v514_v31 = vpop.permute.xlu1 %513 }
 0x92e   :  { %v516_v55 = vmul.f32 %v514_v31, %v496_v26  ;;  %v43_v31 = vld [vmem:[%s1808_s0 + $0x28] sm:$0xff] }
 0x92f   :  { %1215 = vmatmul.msk.f32.gmra.mxu0 %vm52_vm0, %v43_v31  ;;  %v1737_v31 = vld [vmem:[%s1809_s3] ss:$0 sm:$0xff] }
 0x930   :  { %583 = vrot.lane.b32.xlu0 %v516_v55, %s1371_s19 }
 0x986   :  { %v580_v56 = vpop.permute.xlu2 %579 }
 0x987   :  { %1241 = vmatmul.msk.f32.vlgmr.msrb.gmra.mxu3 %vm122_vm5, %v580_v56 }
 0x988   :  { %924 = vmatpush.msrb.mxu3 %v1421_v0 }
 0x98a   :  { %925 = vmatpush.msrb.mxu3 %v1429_v2 }
 0x98c   :  { %926 = vmatpush.msrb.mxu3 %v1441_v5 }
 0x98e   :  { %927 = vmatpush.msrb.mxu3 %v1449_v6 }
 0x9a2   :  { %v584_v44 = vpop.permute.xlu0 %583 }
 0x9a3   :  { %v586_v57 = vsel %vm122_vm5, %v580_v56, %v584_v44 }
 0x9a4   :  { %1238 = vmatmul.msk.f32.vlgmr.msra.gmra.mxu1 %vm193_vm6, %v586_v57 }
 0x9ac   :  { %v109_v44 = vpop.f32.mrf.mxu0 }
 0x9ad   :  { %v110_v57 = vadd.f32 %v1463_v8, %v109_v44 }
 0xa0a   :  { %v667_v60 = vpop.f32.mrf.mxu3 }
 0xa0b   :  { %v670_v61 = vadd.f32 %v667_v60, %v107_v59 }
 0xa0d   :  { %v1242_v34 = vmul.f32 -1.442695, %v670_v61 }
 0xa0f   :  { %1314 = vpow2.f32 %v1242_v34 }
 0xa15   :  { %v1315_v62 = vpop.eup %1314 }
 0xa16   :  { %v674_v63 = vadd.f32 1.0, %v1315_v62 }
 0xa18   :  { %1316 = vrcp.f32 %v674_v63  ;;  %v686_v39 = vand.u32 2147483648, %v674_v63  ;;  %v684_v40 = vand.u32 2147483647, %v674_v63  ;;  %vm680_vm4 = vweird.f32 %v674_v63 }
 0xa1a   :  { %v687_v7 = vor.u32 1.1754944e-38, %v686_v39  ;;  %vm685_vm8 = vcmp.eq.f32.partialorder %v684_v40, 8.507059e+37 }
 0xa1e   :  { %v1317_v1 = vpop.eup %1316 }
 0xa1f   :  { %v676_v35 = vmul.f32 %v1317_v1, %v674_v63  ;;  %vm681_vm3 = vweird.f32 %v1317_v1 }
 0xa20   :  { %vm682_vm7 = vmor %vm680_vm4, %vm681_vm3 }
 0xa21   :  { %v677_v36 = vsub.f32 1.0, %v676_v35  ;;  %v607_v37 = vpop.f32.mrf.mxu1 }
 0xa22   :  { %v608_v38 = vadd.f32 %v1576_v49, %v607_v37 }
 0xa23   :  { %v678_v3 = vmul.f32 %v1317_v1, %v677_v36 }
 0xa24   :  { %v1239_v43 = vmul.f32 -1.442695, %v608_v38 }
 0xa25   :  { %v679_v4 = vadd.f32 %v1317_v1, %v678_v3 }
 0xa26   :  { %1318 = vpow2.f32 %v1239_v43 }
 0xa27   :  { %v683_v9 = vsel %vm682_vm7, %v1317_v1, %v679_v4 }
 0xa28   :  { %v688_v10 = vsel %vm685_vm8, %v687_v7, %v683_v9 }
 0xa29   :  { %v690_v11 = vmul.f32 2.0, %v688_v10  ;;  %v692_v42 = vmul.f32 %v688_v10, %v1657_v46 }
 0xa2b   :  { %v1243_v12 = vadd.f32 -1.0, %v690_v11 }
 0xa2c   :  { %v1319_v13 = vpop.eup %1318 }
 0xa2d   :  { %v613_v14 = vadd.f32 1.0, %v1319_v13  ;;  %694 = vrot.lane.b32.xlu1 %v1243_v12, %s1371_s19 }
 0xa2f   :  { %1320 = vrcp.f32 %v613_v14  ;;  %v625_v18 = vand.u32 2147483648, %v613_v14  ;;  %v623_v20 = vand.u32 2147483647, %v613_v14  ;;  %vm619_vm10 = vweird.f32 %v613_v14 }
 0xa31   :  { %v626_v22 = vor.u32 1.1754944e-38, %v625_v18  ;;  %vm624_vm12 = vcmp.eq.f32.partialorder %v623_v20, 8.507059e+37 }
 0xa35   :  { %v1321_v15 = vpop.eup %1320 }
 0xa36   :  { %v615_v16 = vmul.f32 %v1321_v15, %v613_v14  ;;  %vm620_vm9 = vweird.f32 %v1321_v15 }
 0xa37   :  { %vm621_vm11 = vmor %vm619_vm10, %vm620_vm9 }
 0xa38   :  { %v616_v17 = vsub.f32 1.0, %v615_v16 }
 0xa3a   :  { %v617_v19 = vmul.f32 %v1321_v15, %v616_v17 }
 0xa3c   :  { %v618_v21 = vadd.f32 %v1321_v15, %v617_v19 }
 0xa3e   :  { %v622_v23 = vsel %vm621_vm11, %v1321_v15, %v618_v21 }
 0xa3f   :  { %v627_v24 = vsel %vm624_vm12, %v626_v22, %v622_v23 }
 0xa40   :  { %v629_v25 = vmul.f32 2.0, %v627_v24  ;;  %v631_v33 = vmul.f32 %v627_v24, %v1661_v50 }
 0xa42   :  { %v1240_v26 = vadd.f32 -1.0, %v629_v25 }
 0xa44   :  { %633 = vrot.lane.b32.xlu2 %v1240_v26, %s1371_s19 }
 0xa9e   :  { %v634_v27 = vpop.permute.xlu2 %633 }
 0xa9f   :  { %v636_v28 = vmul.f32 %v634_v27, %v627_v24  ;;  %v695_v29 = vpop.permute.xlu1 %694 }
 0xaa0   :  { %v697_v30 = vmul.f32 %v695_v29, %v688_v10 }
 0xaa1   :  { %638 = vrot.lane.b32.xlu1 %v636_v28, %s1372_s20 }
 0xaa2   :  { %699 = vrot.lane.b32.xlu0 %v697_v30, %s1372_s20 }
 0xb13   :  { %v639_v41 = vpop.permute.xlu1 %638 }
 0xb14   :  { %v1687_v45 = vadd.f32 %v639_v41, %v631_v33  ;;  %v700_v47 = vpop.permute.xlu0 %699 }
 0xb15   :  { %v1689_v48 = vadd.f32 %v700_v47, %v692_v42 }
 0xb16   :  { %1322 = vtanh.f32 %v1687_v45 }
 0xb17   :  { %1324 = vtanh.f32 %v1689_v48 }
 0xb1c   :  { %v1323_v51 = vpop.eup %1322 }
 0xb1d   :  { %v1325_v53 = vpop.eup %1324  ;;  %644 = vrot.lane.b32.xlu0 %v1323_v51, %s1371_s19 }
 0xb1e   :  { %705 = vrot.lane.b32.xlu2 %v1325_v53, %s1371_s19 }
 0xb78   :  { %v706_v54 = vpop.permute.xlu2 %705 }
 0xb79   :  { %v708_v50 = vmul.f32 %v706_v54, %v688_v10 }
 0xb7b   :  { %710 = vrot.lane.b32.xlu1 %v708_v50, %s1372_s20 }
 0xb8f   :  { %v645_v46 = vpop.permute.xlu0 %644 }
 0xb90   :  { %v647_v32 = vmul.f32 %v645_v46, %v627_v24 }
 0xb92   :  { %714 = vrot.lane.b32.xlu2 %v647_v32, %s1371_s19 }
 0xbec   :  { %v715_v55 = vpop.permute.xlu2 %714 }
 0xbed   :  { %v711_v52 = vpop.permute.xlu1 %710 }
 0xbee   :  { %v717_v56 = vsel %vm122_vm5, %v711_v52, %v715_v55  ;;  %1247 = vmatmul.msk.f32.vlgmr.msra.gmra.mxu3 %vm122_vm5, %v711_v52 }
 0xbef   :  { %1244 = vmatmul.msk.f32.vlgmr.msra.gmra.mxu2 %vm193_vm6, %v717_v56  ;;  %1055 = vmatpush.msra.mxu3 %v1421_v0 }
 0xbf1   :  { %1056 = vmatpush.msra.mxu3 %v1429_v2 }
 0xbf3   :  { %1057 = vmatpush.msra.mxu3 %v1441_v5 }
 0xbf5   :  { %1058 = vmatpush.msra.mxu3 %v1449_v6 }
 0xc71   :  { %v798_v58 = vpop.f32.mrf.mxu3 }
 0xc72   :  { %v801_v59 = vadd.f32 %v798_v58, %v110_v57  ;;  %v738_v60 = vpop.f32.mrf.mxu2 }
 0xc73   :  { %v739_v61 = vadd.f32 %v1576_v49, %v738_v60 }
 0xc74   :  { %v1248_v34 = vmul.f32 -1.442695, %v801_v59 }
 0xc75   :  { %v1245_v62 = vmul.f32 -1.442695, %v739_v61 }
 0xc76   :  { %1326 = vpow2.f32 %v1248_v34 }
 0xc77   :  { %1328 = vpow2.f32 %v1245_v62 }
 0xc7c   :  { %v1327_v63 = vpop.eup %1326 }
 0xc7d   :  { %v1329_v0 = vpop.eup %1328  ;;  %v805_v1 = vadd.f32 1.0, %v1327_v63 }
 0xc7e   :  { %v744_v2 = vadd.f32 1.0, %v1329_v0 }
 0xc7f   :  { %1330 = vrcp.f32 %v805_v1  ;;  %v817_v38 = vand.u32 2147483648, %v805_v1  ;;  %v815_v3 = vand.u32 2147483647, %v805_v1  ;;  %vm811_vm15 = vweird.f32 %v805_v1 }
 0xc80   :  { %1332 = vrcp.f32 %v744_v2  ;;  %v756_v40 = vand.u32 2147483648, %v744_v2  ;;  %v754_v4 = vand.u32 2147483647, %v744_v2  ;;  %vm750_vm2 = vweird.f32 %v744_v2 }
 0xc81   :  { %v818_v9 = vor.u32 1.1754944e-38, %v817_v38  ;;  %vm816_vm3 = vcmp.eq.f32.partialorder %v815_v3, 8.507059e+37 }
 0xc82   :  { %v757_v12 = vor.u32 1.1754944e-38, %v756_v40  ;;  %vm755_vm7 = vcmp.eq.f32.partialorder %v754_v4, 8.507059e+37 }
 0xc85   :  { %v1331_v5 = vpop.eup %1330 }
 0xc86   :  { %v1333_v6 = vpop.eup %1332  ;;  %v807_v35 = vmul.f32 %v1331_v5, %v805_v1  ;;  %vm812_vm13 = vweird.f32 %v1331_v5 }
 0xc87   :  { %v746_v36 = vmul.f32 %v1333_v6, %v744_v2  ;;  %vm751_vm14 = vweird.f32 %v1333_v6  ;;  %vm813_vm1 = vmor %vm811_vm15, %vm812_vm13 }
 0xc88   :  { %v808_v8 = vsub.f32 1.0, %v807_v35  ;;  %vm752_vm4 = vmor %vm750_vm2, %vm751_vm14 }
 0xc89   :  { %v747_v37 = vsub.f32 1.0, %v746_v36 }
 0xc8a   :  { %v809_v39 = vmul.f32 %v1331_v5, %v808_v8 }
 0xc8b   :  { %v748_v43 = vmul.f32 %v1333_v6, %v747_v37 }
 0xc8c   :  { %v810_v7 = vadd.f32 %v1331_v5, %v809_v39 }
 0xc8d   :  { %v749_v10 = vadd.f32 %v1333_v6, %v748_v43 }
 0xc8e   :  { %v814_v11 = vsel %vm813_vm1, %v1331_v5, %v810_v7 }
 0xc8f   :  { %v819_v13 = vsel %vm816_vm3, %v818_v9, %v814_v11  ;;  %v753_v14 = vsel %vm752_vm4, %v1333_v6, %v749_v10 }
 0xc90   :  { %v821_v15 = vmul.f32 2.0, %v819_v13  ;;  %v758_v16 = vsel %vm755_vm7, %v757_v12, %v753_v14  ;;  %v823_v24 = vmul.f32 %v819_v13, %v1689_v48 }
 0xc91   :  { %v760_v17 = vmul.f32 2.0, %v758_v16  ;;  %v762_v28 = vmul.f32 %v758_v16, %v1687_v45  ;;  %v44_v45 = vld [vmem:[%s1808_s0 + $0x30] sm:$0xff] }
 0xc92   :  { %v1249_v18 = vadd.f32 -1.0, %v821_v15  ;;  %1216 = vmatmul.msk.f32.gmra.mxu0 %vm52_vm0, %v44_v45 }
 0xc93   :  { %v1246_v19 = vadd.f32 -1.0, %v760_v17 }
 0xc94   :  { %825 = vrot.lane.b32.xlu0 %v1249_v18, %s1371_s19 }
 0xc95   :  { %764 = vrot.lane.b32.xlu1 %v1246_v19, %s1371_s19 }
 0xd06   :  { %v826_v20 = vpop.permute.xlu0 %825 }
 0xd07   :  { %v828_v21 = vmul.f32 %v826_v20, %v819_v13  ;;  %v765_v22 = vpop.permute.xlu1 %764 }
 0xd08   :  { %v767_v23 = vmul.f32 %v765_v22, %v758_v16 }
 0xd09   :  { %830 = vrot.lane.b32.xlu2 %v828_v21, %s1372_s20 }
 0xd0a   :  { %769 = vrot.lane.b32.xlu0 %v767_v23, %s1372_s20 }
 0xd0f   :  { %v112_v50 = vpop.f32.mrf.mxu0 }
 0xd10   :  { %v113_v55 = vadd.f32 %v1737_v31, %v112_v50 }
 0xd63   :  { %v831_v25 = vpop.permute.xlu2 %830 }
 0xd64   :  { %v1715_v26 = vadd.f32 %v831_v25, %v823_v24 }
 0xd66   :  { %1334 = vtanh.f32 %v1715_v26 }
 0xd6c   :  { %v1335_v27 = vpop.eup %1334 }
 0xd6d   :  { %836 = vrot.lane.b32.xlu1 %v1335_v27, %s1371_s19 }
 0xd7c   :  { %v770_v29 = vpop.permute.xlu0 %769 }
 0xd7d   :  { %v1720_v30 = vadd.f32 %v770_v29, %v762_v28 }
 0xd7f   :  { %1336 = vtanh.f32 %v1720_v30 }
 0xd85   :  { %v1337_v33 = vpop.eup %1336 }
 0xd86   :  { %775 = vrot.lane.b32.xlu2 %v1337_v33, %s1371_s19 }
 0xddf   :  { %v837_v41 = vpop.permute.xlu1 %836 }
 0xde0   :  { %v839_v42 = vmul.f32 %v837_v41, %v819_v13  ;;  %v776_v47 = vpop.permute.xlu2 %775 }
 0xde1   :  { %v778_v48 = vmul.f32 %v776_v47, %v758_v16 }
 0xde2   :  { %841 = vrot.lane.b32.xlu0 %v839_v42, %s1372_s20 }
 0xde3   :  { %845 = vrot.lane.b32.xlu1 %v778_v48, %s1371_s19 }
 0xe54   :  { %v842_v51 = vpop.permute.xlu0 %841 }
 0xe55   :  { %1253 = vmatmul.msk.f32.vlgmr.msrb.gmra.mxu3 %vm122_vm5, %v842_v51  ;;  %v846_v53 = vpop.permute.xlu1 %845 }
 0xe56   :  { %v848_v54 = vsel %vm122_vm5, %v842_v51, %v846_v53 }
 0xe57   :  { %1250 = vmatmul.msk.f32.vlgmr.msrb.gmra.mxu1 %vm193_vm6, %v848_v54 }
 0xed4   :  { %v869_v46 = vpop.f32.mrf.mxu1 }
 0xed5   :  { %v870_v32 = vadd.f32 %v1576_v49, %v869_v46 }
 0xed7   :  { %v1251_v52 = vmul.f32 -1.442695, %v870_v32 }
 0xed8   :  { %v929_v56 = vpop.f32.mrf.mxu3 }
 0xed9   :  { %1338 = vpow2.f32 %v1251_v52  ;;  %v932_v44 = vadd.f32 %v929_v56, %v113_v55  ;;  %v1767_v55 = vld [vmem:[%s1811_s5] ss:$0 sm:$0xff] }
 0xedb   :  { %v1254_v57 = vmul.f32 -1.442695, %v932_v44 }
 0xedd   :  { %1340 = vpow2.f32 %v1254_v57 }
 0xedf   :  { %v1339_v58 = vpop.eup %1338 }
 0xee0   :  { %v875_v59 = vadd.f32 1.0, %v1339_v58 }
 0xee2   :  { %1342 = vrcp.f32 %v875_v59  ;;  %v885_v0 = vand.u32 2147483647, %v875_v59  ;;  %v887_v1 = vand.u32 2147483648, %v875_v59  ;;  %vm881_vm9 = vweird.f32 %v875_v59 }
 0xee3   :  { %v1341_v60 = vpop.eup %1340 }
 0xee4   :  { %v936_v61 = vadd.f32 1.0, %v1341_v60  ;;  %vm886_vm11 = vcmp.eq.f32.partialorder %v885_v0, 8.507059e+37  ;;  %v888_v36 = vor.u32 1.1754944e-38, %v887_v1 }
 0xee6   :  { %1344 = vrcp.f32 %v936_v61  ;;  %v948_v8 = vand.u32 2147483648, %v936_v61  ;;  %v946_v39 = vand.u32 2147483647, %v936_v61  ;;  %vm942_vm13 = vweird.f32 %v936_v61 }
 0xee8   :  { %v1343_v49 = vpop.eup %1342  ;;  %v949_v4 = vor.u32 1.1754944e-38, %v948_v8  ;;  %vm947_vm15 = vcmp.eq.f32.partialorder %v946_v39, 8.507059e+37 }
 0xee9   :  { %v877_v34 = vmul.f32 %v1343_v49, %v875_v59  ;;  %vm882_vm8 = vweird.f32 %v1343_v49 }
 0xeea   :  { %vm883_vm10 = vmor %vm881_vm9, %vm882_vm8 }
 0xeeb   :  { %v878_v62 = vsub.f32 1.0, %v877_v34 }
 0xeec   :  { %v1345_v63 = vpop.eup %1344 }
 0xeed   :  { %v938_v2 = vmul.f32 %v1345_v63, %v936_v61  ;;  %v879_v5 = vmul.f32 %v1343_v49, %v878_v62  ;;  %vm943_vm12 = vweird.f32 %v1345_v63 }
 0xeee   :  { %vm944_vm14 = vmor %vm942_vm13, %vm943_vm12 }
 0xeef   :  { %v939_v6 = vsub.f32 1.0, %v938_v2  ;;  %v880_v35 = vadd.f32 %v1343_v49, %v879_v5 }
 0xef1   :  { %v884_v37 = vsel %vm883_vm10, %v1343_v49, %v880_v35  ;;  %v940_v38 = vmul.f32 %v1345_v63, %v939_v6 }
 0xef2   :  { %v889_v3 = vsel %vm886_vm11, %v888_v36, %v884_v37 }
 0xef3   :  { %v891_v40 = vmul.f32 2.0, %v889_v3  ;;  %v941_v43 = vadd.f32 %v1345_v63, %v940_v38  ;;  %v893_v17 = vmul.f32 %v889_v3, %v1720_v30 }
 0xef5   :  { %v1252_v7 = vadd.f32 -1.0, %v891_v40  ;;  %v945_v9 = vsel %vm944_vm14, %v1345_v63, %v941_v43 }
 0xef6   :  { %v950_v10 = vsel %vm947_vm15, %v949_v4, %v945_v9 }
 0xef7   :  { %895 = vrot.lane.b32.xlu2 %v1252_v7, %s1371_s19  ;;  %v952_v11 = vmul.f32 2.0, %v950_v10  ;;  %v954_v20 = vmul.f32 %v950_v10, %v1715_v26  ;;  %v45_v26 = vld [vmem:[%s1808_s0 + $0x38] sm:$0xff] }
 0xef8   :  { %1217 = vmatmul.msk.f32.gmra.mxu0 %vm52_vm0, %v45_v26 }
 0xef9   :  { %v1255_v12 = vadd.f32 -1.0, %v952_v11 }
 0xefb   :  { %956 = vrot.lane.b32.xlu0 %v1255_v12, %s1371_s19 }
 0xf51   :  { %v896_v13 = vpop.permute.xlu2 %895 }
 0xf52   :  { %v898_v14 = vmul.f32 %v896_v13, %v889_v3 }
 0xf54   :  { %900 = vrot.lane.b32.xlu1 %v898_v14, %s1372_s20 }
 0xf6d   :  { %v957_v15 = vpop.permute.xlu0 %956 }
 0xf6e   :  { %v959_v16 = vmul.f32 %v957_v15, %v950_v10 }
 0xf70   :  { %961 = vrot.lane.b32.xlu2 %v959_v16, %s1372_s20 }
 0xf75   :  { %v115_v42 = vpop.f32.mrf.mxu0 }
 0xf76   :  { %v116_v47 = vadd.f32 %v1737_v31, %v115_v42 }
 0xfc6   :  { %v901_v18 = vpop.permute.xlu1 %900 }
 0xfc7   :  { %v1745_v19 = vadd.f32 %v901_v18, %v893_v17 }
 0xfc9   :  { %1346 = vtanh.f32 %v1745_v19 }
 0xfca   :  { %v962_v21 = vpop.permute.xlu2 %961 }
 0xfcb   :  { %v1749_v22 = vadd.f32 %v962_v21, %v954_v20 }
 0xfcd   :  { %1348 = vtanh.f32 %v1749_v22 }
 0xfcf   :  { %v1347_v23 = vpop.eup %1346 }
 0xfd0   :  { %906 = vrot.lane.b32.xlu0 %v1347_v23, %s1371_s19 }
 0xfd3   :  { %v1349_v24 = vpop.eup %1348 }
 0xfd4   :  { %967 = vrot.lane.b32.xlu1 %v1349_v24, %s1371_s19 }
0x1042   :  { %v907_v25 = vpop.permute.xlu0 %906 }
0x1043   :  { %v909_v27 = vmul.f32 %v907_v25, %v889_v3 }
0x1045   :  { %976 = vrot.lane.b32.xlu0 %v909_v27, %s1371_s19 }
0x1046   :  { %v968_v28 = vpop.permute.xlu1 %967 }
0x1047   :  { %v970_v29 = vmul.f32 %v968_v28, %v950_v10 }
0x1049   :  { %972 = vrot.lane.b32.xlu2 %v970_v29, %s1372_s20 }
0x10a3   :  { %v973_v30 = vpop.permute.xlu2 %972 }
0x10a4   :  { %1259 = vmatmul.msk.f32.vlgmr.msra.gmra.mxu3 %vm122_vm5, %v973_v30 }
0x10b7   :  { %v977_v33 = vpop.permute.xlu0 %976 }
0x10b8   :  { %v979_v41 = vsel %vm122_vm5, %v973_v30, %v977_v33 }
0x10b9   :  { %1256 = vmatmul.msk.f32.vlgmr.msrb.gmra.mxu2 %vm193_vm6, %v979_v41 }
0x1127   :  { %v1060_v48 = vpop.f32.mrf.mxu3 }
0x1128   :  { %v1063_v45 = vadd.f32 %v1060_v48, %v116_v47 }
0x112a   :  { %v1260_v51 = vmul.f32 -1.442695, %v1063_v45 }
0x112c   :  { %1350 = vpow2.f32 %v1260_v51 }
0x1132   :  { %v1351_v53 = vpop.eup %1350 }
0x1133   :  { %v1067_v54 = vadd.f32 1.0, %v1351_v53 }
0x1135   :  { %1352 = vrcp.f32 %v1067_v54  ;;  %v1079_v31 = vand.u32 2147483648, %v1067_v54  ;;  %v1077_v58 = vand.u32 2147483647, %v1067_v54  ;;  %vm1073_vm1 = vweird.f32 %v1067_v54 }
0x1137   :  { %v1080_v60 = vor.u32 1.1754944e-38, %v1079_v31  ;;  %vm1078_vm3 = vcmp.eq.f32.partialorder %v1077_v58, 8.507059e+37  ;;  %v1174_v58 = vld [vmem:[%s1812_s6 + $0x10] sm:$0xff] }
0x113b   :  { %v1353_v50 = vpop.eup %1352 }
0x113c   :  { %v1069_v46 = vmul.f32 %v1353_v50, %v1067_v54  ;;  %v1000_v32 = vpop.f32.mrf.mxu2  ;;  %vm1074_vm0 = vweird.f32 %v1353_v50 }
0x113d   :  { %v1001_v52 = vadd.f32 %v1767_v55, %v1000_v32  ;;  %vm1075_vm2 = vmor %vm1073_vm1, %vm1074_vm0 }
0x113e   :  { %v1070_v56 = vsub.f32 1.0, %v1069_v46 }
0x113f   :  { %v1257_v44 = vmul.f32 -1.442695, %v1001_v52 }
0x1140   :  { %v1071_v57 = vmul.f32 %v1353_v50, %v1070_v56 }
0x1141   :  { %1354 = vpow2.f32 %v1257_v44 }
0x1142   :  { %v1072_v59 = vadd.f32 %v1353_v50, %v1071_v57  ;;  %v1175_v57 = vld [vmem:[%s1812_s6 + $0x18] sm:$0xff] }
0x1143   :  { %1197 = vmatpush.msra.mxu1 %v1175_v57 }
0x1144   :  { %v1076_v61 = vsel %vm1075_vm2, %v1353_v50, %v1072_v59  ;;  %v1173_v59 = vld [vmem:[%s1812_s6 + $0x8] sm:$0xff] }
0x1145   :  { %v1081_v49 = vsel %vm1078_vm3, %v1080_v60, %v1076_v61  ;;  %1198 = vmatpush.msra.mxu1 %v1174_v58  ;;  %v1172_v60 = vld [vmem:[%s1812_s6] sm:$0xff] }
0x1146   :  { %v1083_v34 = vmul.f32 2.0, %v1081_v49  ;;  %v1085_v10 = vmul.f32 %v1081_v49, %v1749_v22 }
0x1147   :  { %v1355_v62 = vpop.eup %1354  ;;  %1199 = vmatpush.msra.mxu1 %v1173_v59 }
0x1148   :  { %v1006_v63 = vadd.f32 1.0, %v1355_v62  ;;  %v1261_v0 = vadd.f32 -1.0, %v1083_v34  ;;  %v1271_v62 = vld [vmem:[%s1813_s7] ss:$0 sm:$0xff] }
0x1149   :  { %1200 = vmatpush.msra.mxu1 %v1172_v60 }
0x114a   :  { %1356 = vrcp.f32 %v1006_v63  ;;  %1087 = vrot.lane.b32.xlu2 %v1261_v0, %s1371_s19  ;;  %v1018_v6 = vand.u32 2147483648, %v1006_v63  ;;  %v1016_v36 = vand.u32 2147483647, %v1006_v63  ;;  %vm1012_vm7 = vweird.f32 %v1006_v63 }
0x114c   :  { %v1019_v37 = vor.u32 1.1754944e-38, %v1018_v6  ;;  %vm1017_vm9 = vcmp.eq.f32.partialorder %v1016_v36, 8.507059e+37 }
0x1150   :  { %v1357_v1 = vpop.eup %1356 }
0x1151   :  { %v1008_v2 = vmul.f32 %v1357_v1, %v1006_v63  ;;  %vm1013_vm4 = vweird.f32 %v1357_v1 }
0x1152   :  { %vm1014_vm8 = vmor %vm1012_vm7, %vm1013_vm4 }
0x1153   :  { %v1009_v5 = vsub.f32 1.0, %v1008_v2 }
0x1155   :  { %v1010_v35 = vmul.f32 %v1357_v1, %v1009_v5 }
0x1157   :  { %v1011_v8 = vadd.f32 %v1357_v1, %v1010_v35 }
0x1159   :  { %v1015_v38 = vsel %vm1014_vm8, %v1357_v1, %v1011_v8 }
0x115a   :  { %v1020_v39 = vsel %vm1017_vm9, %v1019_v37, %v1015_v38 }
0x115b   :  { %v1022_v3 = vmul.f32 2.0, %v1020_v39  ;;  %v1024_v14 = vmul.f32 %v1020_v39, %v1745_v19 }
0x115d   :  { %v1258_v40 = vadd.f32 -1.0, %v1022_v3 }
0x115f   :  { %1026 = vrot.lane.b32.xlu1 %v1258_v40, %s1371_s19 }
0x11a4   :  { %v1088_v43 = vpop.permute.xlu2 %1087 }
0x11a5   :  { %v1090_v4 = vmul.f32 %v1088_v43, %v1081_v49 }
0x11a7   :  { %1092 = vrot.lane.b32.xlu1 %v1090_v4, %s1372_s20 }
0x11d1   :  { %v1027_v7 = vpop.permute.xlu1 %1026 }
0x11d2   :  { %v1029_v9 = vmul.f32 %v1027_v7, %v1020_v39 }
0x11d4   :  { %1031 = vrot.lane.b32.xlu0 %v1029_v9, %s1372_s20 }
0x1219   :  { %v1093_v11 = vpop.permute.xlu1 %1092 }
0x121a   :  { %v1095_v12 = vadd.f32 %v1093_v11, %v1085_v10 }
0x121c   :  { %1358 = vtanh.f32 %v1095_v12 }
0x1222   :  { %v1359_v13 = vpop.eup %1358 }
0x1223   :  { %1098 = vrot.lane.b32.xlu0 %v1359_v13, %s1371_s19 }
0x1246   :  { %v1032_v15 = vpop.permute.xlu0 %1031 }
0x1247   :  { %v1034_v16 = vadd.f32 %v1032_v15, %v1024_v14 }
0x1249   :  { %1360 = vtanh.f32 %v1034_v16 }
0x124f   :  { %v1361_v17 = vpop.eup %1360 }
0x1250   :  { %1037 = vrot.lane.b32.xlu2 %v1361_v17, %s1371_s19 }
0x1295   :  { %v1099_v18 = vpop.permute.xlu0 %1098 }
0x1296   :  { %v1101_v20 = vmul.f32 %v1099_v18, %v1081_v49 }
0x1298   :  { %1103 = vrot.lane.b32.xlu1 %v1101_v20, %s1372_s20 }
0x12aa   :  { %v1038_v21 = vpop.permute.xlu2 %1037 }
0x12ab   :  { %v1040_v22 = vmul.f32 %v1038_v21, %v1020_v39 }
0x12ad   :  { %1107 = vrot.lane.b32.xlu2 %v1040_v22, %s1371_s19 }
0x1307   :  { %v1108_v23 = vpop.permute.xlu2 %1107 }
0x130a   :  { %v1104_v24 = vpop.permute.xlu1 %1103 }
0x130b   :  { %v1110_v25 = vsel %vm122_vm5, %v1104_v24, %v1108_v23 }
0x130c   :  { %1262 = vmatmul.msk.f32.vlgmr.msrb.gmra.mxu0 %vm193_vm6, %v1110_v25 }
0x1389   :  { %v1131_v19 = vpop.f32.mrf.mxu0 }
0x138a   :  { %v1132_v27 = vadd.f32 %v1767_v55, %v1131_v19 }
0x138c   :  { %v1263_v28 = vmul.f32 -1.442695, %v1132_v27 }
0x138e   :  { %1362 = vpow2.f32 %v1263_v28 }
0x1394   :  { %v1363_v29 = vpop.eup %1362 }
0x1395   :  { %v1137_v26 = vadd.f32 1.0, %v1363_v29 }
0x1397   :  { %1364 = vrcp.f32 %v1137_v26  ;;  %v1149_v42 = vand.u32 2147483648, %v1137_v26  ;;  %v1147_v48 = vand.u32 2147483647, %v1137_v26  ;;  %vm1143_vm11 = vweird.f32 %v1137_v26 }
0x1399   :  { %v1150_v51 = vor.u32 1.1754944e-38, %v1149_v42  ;;  %vm1148_vm6 = vcmp.eq.f32.partialorder %v1147_v48, 8.507059e+37 }
0x139d   :  { %v1365_v30 = vpop.eup %1364 }
0x139e   :  { %v1139_v33 = vmul.f32 %v1365_v30, %v1137_v26  ;;  %vm1144_vm10 = vweird.f32 %v1365_v30 }
0x139f   :  { %vm1145_vm12 = vmor %vm1143_vm11, %vm1144_vm10 }
0x13a0   :  { %v1140_v41 = vsub.f32 1.0, %v1139_v33 }
0x13a2   :  { %v1141_v47 = vmul.f32 %v1365_v30, %v1140_v41 }
0x13a4   :  { %v1142_v45 = vadd.f32 %v1365_v30, %v1141_v47 }
0x13a6   :  { %v1146_v53 = vsel %vm1145_vm12, %v1365_v30, %v1142_v45 }
0x13a7   :  { %v1151_v54 = vsel %vm1148_vm6, %v1150_v51, %v1146_v53 }
0x13a8   :  { %v1153_v50 = vmul.f32 2.0, %v1151_v54  ;;  %v1155_v52 = vmul.f32 %v1151_v54, %v1034_v16 }
0x13aa   :  { %v1264_v46 = vadd.f32 -1.0, %v1153_v50 }
0x13ac   :  { %1157 = vrot.lane.b32.xlu0 %v1264_v46, %s1371_s19 }
0x141e   :  { %v1158_v32 = vpop.permute.xlu0 %1157 }
0x141f   :  { %v1160_v55 = vmul.f32 %v1158_v32, %v1151_v54 }
0x1421   :  { %1162 = vrot.lane.b32.xlu1 %v1160_v55, %s1372_s20 }
0x1493   :  { %v1163_v56 = vpop.permute.xlu1 %1162 }
0x1494   :  { %v1165_v44 = vadd.f32 %v1163_v56, %v1155_v52 }
0x1496   :  { %1366 = vtanh.f32 %v1165_v44 }
0x149c   :  { %v1367_v31 = vpop.eup %1366 }
0x149d   :  { %1168 = vrot.lane.b32.xlu2 %v1367_v31, %s1371_s19 }
0x14f7   :  { %v1169_v61 = vpop.permute.xlu2 %1168 }
0x14f8   :  { %v1171_v49 = vmul.f32 %v1169_v61, %v1151_v54 }
0x14fa   :  { %1181 = vrot.lane.b32.xlu0 %v1171_v49, %s1372_s20 }
0x156c   :  { %v1182_v34 = vpop.permute.xlu0 %1181 }
0x156d   :  { %1265 = vmatmul.msk.f32.vlgmr.msra.gmra.mxu1 %vm122_vm5, %v1182_v34 }
0x15ea   :  { %v1202_v63 = vpop.f32.mrf.mxu1 }
0x15eb   :  { %v1203_v0 = vadd.f32 %v1271_v62, %v1202_v63 }
0x15ed   :  { %1205 = vst [vmem:[%s1814_s8] sm:$0xff] %v1203_v0 }

</bundles_post_ra>
